<compile_context>
chip_gen: v6e
topology: v6e:2x2x1
jax: 0.10.0
libtpu: 0.0.40
codegen_flags: <defaults>
</compile_context>

<pallas_src>
import jax
import jax.numpy as jnp
from jax.experimental import pallas as pl
from jax.experimental.pallas import tpu as pltpu


def make_encoder_stack_kernel(batch_tile, num_heads, has_attn_mask):
    """One grid step = one transformer block applied to a tile of `batch_tile` samples."""

    def kernel(*refs):
        x_ref, pos_ref, pad_ref = refs[0:3]
        idx = 3
        am_ref = None
        if has_attn_mask:
            am_ref = refs[3]
            idx = 4
        (ln1g_ref, ln1b_ref, wqkv_ref, bqkv_ref, wo_ref, bo_ref,
         ln2g_ref, ln2b_ref, w1_ref, b1_ref, w2_ref, b2_ref,
         o_ref,
         carry_ref, bias_ref, q_slab, k_slab, v_slab, ctx_slab) = refs[idx:]

        layer = pl.program_id(1)
        last_layer = pl.num_programs(1) - 1

        TB = batch_tile
        _, S, D = x_ref.shape
        M = TB * S
        H = num_heads
        hd = D // H
        H4 = w1_ref.shape[-1]
        scale = 1.0 / float(hd) ** 0.5

        # ---- per-batch-tile init (first layer only) ----
        @pl.when(layer == 0)
        def _():
            carry_ref[...] = x_ref[...].reshape(M, D).astype(jnp.float32)
            # Additive key-padding bias, built once per tile (not per layer).
            bias_ref[...] = jnp.where(pad_ref[...] > 0.5,
                                      jnp.float32(-1e30), jnp.float32(0.0))

        def layernorm(v, g_ref, b_ref):
            g = g_ref[0].astype(jnp.float32)            # (1, D)
            b = b_ref[0].astype(jnp.float32)
            mu = jnp.mean(v, axis=-1, keepdims=True)
            var = jnp.mean(jnp.square(v - mu), axis=-1, keepdims=True)
            return (v - mu) * jax.lax.rsqrt(var + 1e-5) * g + b

        pos = jnp.broadcast_to(pos_ref[...].astype(jnp.float32), (TB, S, D))
        y = carry_ref[...] + pos.reshape(M, D)          # x + pos (per block), f32

        # ---- Multi-head self-attention (pre-norm), fused QKV projection ----
        ln1 = layernorm(y, ln1g_ref, ln1b_ref)
        qkv = jnp.dot(ln1.astype(jnp.bfloat16), wqkv_ref[0],
                      preferred_element_type=jnp.float32)
        qkv = qkv + bqkv_ref[0].astype(jnp.float32)     # (M, 3D) f32

        # Head-major staging slabs (TB, H, S, hd): one relayout per layer; all
        # per-head tiles inside the attention loop start at lane 0.
        q_part = (qkv[:, 0:D] * scale).astype(jnp.bfloat16).reshape(TB, S, D)
        k_part = qkv[:, D:2 * D].astype(jnp.bfloat16).reshape(TB, S, D)
        v_part = qkv[:, 2 * D:3 * D].astype(jnp.bfloat16).reshape(TB, S, D)
        for hh in range(H):                             # static staging loop
            lo = hh * hd
            q_slab[:, hh] = q_part[:, :, lo:lo + hd]
            k_slab[:, hh] = k_part[:, :, lo:lo + hd]
            v_slab[:, hh] = v_part[:, :, lo:lo + hd]

        # Per-sample softmax/mask; heads via fori_loop (caps vreg live ranges).
        unroll_heads = H <= 4
        for b in range(TB):                             # static, small
            bias_b = bias_ref[b]                        # (1, S) f32
            if has_attn_mask:
                bias_b = bias_b + am_ref[0].astype(jnp.float32)   # (S, S)

            def head_body(hh, carry, b=b, bias_b=bias_b):
                qh = q_slab[b, hh]                      # (S, hd) bf16, lane-aligned
                kh = k_slab[b, hh]
                vh = v_slab[b, hh]
                s = jax.lax.dot_general(qh, kh, (((1,), (1,)), ((), ())),
                                        preferred_element_type=jnp.float32)
                s = s + bias_b
                m = jnp.max(s, axis=-1, keepdims=True)
                p = jnp.exp(s - m)
                denom = jnp.sum(p, axis=-1, keepdims=True)
                inv = pl.reciprocal(denom, approx=True)  # EUP
                # normalize after the PV matmul: S*hd mults instead of S*S
                ctx = jnp.dot(p.astype(jnp.bfloat16), vh,
                              preferred_element_type=jnp.float32) * inv
                ctx_slab[b, hh] = ctx.astype(jnp.bfloat16)
                return carry

            jax.lax.fori_loop(0, H, head_body, 0, unroll=unroll_heads)

        # Output projection accumulated per head (K-split matmul): avoids both a
        # reverse head->lane relayout and masked partial stores.
        attn = None
        for hh in range(H):
            lo = hh * hd
            ctx_h = ctx_slab[:, hh].reshape(M, hd)      # (M, hd) bf16
            wo_h = wo_ref[0, lo:lo + hd, :]             # (hd, D) bf16
            part = jnp.dot(ctx_h, wo_h, preferred_element_type=jnp.float32)
            attn = part if attn is None else attn + part
        y = y + attn + bo_ref[0].astype(jnp.float32)

        # ---- MLP (pre-norm), chunked over the hidden dimension ----
        ln2 = layernorm(y, ln2g_ref, ln2b_ref)
        ln2_bf = ln2.astype(jnp.bfloat16)
        C = min(H4, 512)
        mlp = None
        for c0 in range(0, H4, C):
            c1 = min(c0 + C, H4)
            w1_c = w1_ref[0, :, c0:c1]                  # (D, C) bf16
            b1_c = b1_ref[0, :, c0:c1].astype(jnp.float32)
            f_c = jnp.dot(ln2_bf, w1_c, preferred_element_type=jnp.float32) + b1_c
            # TODO(synk): PyTorch nn.GELU default is the exact erf form; tanh approx used.
            f_c = jax.nn.gelu(f_c, approximate=True)
            w2_c = w2_ref[0, c0:c1, :]                  # (C, D) bf16
            part = jnp.dot(f_c.astype(jnp.bfloat16), w2_c,
                           preferred_element_type=jnp.float32)
            mlp = part if mlp is None else mlp + part
        y = y + mlp + b2_ref[0].astype(jnp.float32)

        carry_ref[...] = y                              # carry to next layer

        @pl.when(layer == last_layer)
        def _():
            o_ref[...] = y.reshape(TB, S, D).astype(o_ref.dtype)

    return kernel


def _pick_batch_tile(B):
    for tb in (8, 4, 2, 1):
        if B % tb == 0:
            return tb
    return 1


def _pick_vmem_limit(needed_bytes):
    cap = 40 * 1024 * 1024                      # safe on v7x (64 MiB physical)
    try:
        info = pltpu.get_tpu_info()
        cap = min(int(info.vmem_capacity_bytes * 0.7), 100 * 1024 * 1024)
    except Exception:
        pass
    return int(min(max(needed_bytes, 32 * 1024 * 1024), cap))


def transformer_encoder(x, pos, params, num_heads,
                        padding_mask=None, attn_mask=None, batch_tile=None):
    """Matches TransformerEncoder.forward; all `depth` blocks in one pallas_call."""
    B, S, D = x.shape
    depth = params["wqkv"].shape[0]
    H4 = params["w1"].shape[-1]
    hd = D // num_heads

    TB = batch_tile if batch_tile is not None else _pick_batch_tile(B)
    assert B % TB == 0

    if pos.ndim == 2:
        pos = pos[None]
    pos = pos.astype(jnp.float32)               # (1, S, D), broadcast over batch

    pad = (padding_mask.astype(jnp.float32).reshape(B, 1, S)
           if padding_mask is not None
           else jnp.zeros((B, 1, S), jnp.float32))

    has_attn_mask = attn_mask is not None
    if has_attn_mask:
        am = attn_mask
        if am.dtype == jnp.bool_:
            # PyTorch bool attn_mask: True => disallowed.
            am = jnp.where(am, jnp.float32(-1e30), jnp.float32(0.0))
        am = am.astype(jnp.float32).reshape(1, S, S)

    in_specs = [
        pl.BlockSpec((TB, S, D), lambda b, l: (b, 0, 0)),   # x  (batch tile)
        pl.BlockSpec((1, S, D), lambda b, l: (0, 0, 0)),    # pos (broadcast)
        pl.BlockSpec((TB, 1, S), lambda b, l: (b, 0, 0)),   # key-padding mask
    ]
    inputs = [x, pos, pad]
    if has_attn_mask:
        in_specs.append(pl.BlockSpec((1, S, S), lambda b, l: (0, 0, 0)))
        inputs.append(am)

    weight_order = ["ln1_g", "ln1_b", "wqkv", "bqkv", "wo", "bo",
                    "ln2_g", "ln2_b", "w1", "b1", "w2", "b2"]
    for name in weight_order:
        arr = params[name]
        in_specs.append(pl.BlockSpec((1,) + tuple(arr.shape[1:]),
                                     lambda b, l: (l, 0, 0)))
        inputs.append(arr)

    # Rough VMEM budget: double-buffered per-layer weights + IO blocks + scratch.
    per_layer_w = sum((int(v.size) // depth) * v.dtype.itemsize
                      for v in params.values())
    io_bytes = 2 * TB * S * D * x.dtype.itemsize + S * D * 4 + TB * S * 4
    if has_attn_mask:
        io_bytes += S * S * 4
    slab_bytes = 4 * TB * num_heads * max(S, 8) * max(hd, 128) * 2
    scratch_bytes = TB * S * D * 4 + TB * max(S, 128) * 4 + slab_bytes
    needed = 2 * per_layer_w + 2 * io_bytes + scratch_bytes + (8 << 20)
    vmem_limit = _pick_vmem_limit(needed)

    kernel = make_encoder_stack_kernel(TB, num_heads, has_attn_mask)

    return pl.pallas_call(
        kernel,
        out_shape=jax.ShapeDtypeStruct((B, S, D), x.dtype),
        grid_spec=pltpu.PrefetchScalarGridSpec(
            num_scalar_prefetch=0,
            grid=(B // TB, depth),                          # layer axis innermost
            in_specs=in_specs,
            out_specs=pl.BlockSpec((TB, S, D), lambda b, l: (b, 0, 0)),
            scratch_shapes=[
                pltpu.VMEM((TB * S, D), jnp.float32),              # activation carry
                pltpu.VMEM((TB, 1, S), jnp.float32),               # key-padding bias
                pltpu.VMEM((TB, num_heads, S, hd), jnp.bfloat16),  # Q (head-major)
                pltpu.VMEM((TB, num_heads, S, hd), jnp.bfloat16),  # K (head-major)
                pltpu.VMEM((TB, num_heads, S, hd), jnp.bfloat16),  # V (head-major)
                pltpu.VMEM((TB, num_heads, S, hd), jnp.bfloat16),  # ctx (head-major)
            ],
        ),
        compiler_params=pltpu.CompilerParams(
            dimension_semantics=("parallel", "arbitrary"),
            vmem_limit_bytes=vmem_limit,
        ),
    )(*inputs)


def init_params(key, embed_dim, depth, mlp_ratio=4):
    """Stacked per-layer weights; matmul weights stored bf16, norms/biases f32."""
    D, H4 = embed_dim, embed_dim * mlp_ratio
    ks = jax.random.split(key, 4)

    def w(k, shape):
        return (0.02 * jax.random.normal(k, shape, jnp.float32)).astype(jnp.bfloat16)

    return dict(
        ln1_g=jnp.ones((depth, 1, D), jnp.float32),
        ln1_b=jnp.zeros((depth, 1, D), jnp.float32),
        wqkv=w(ks[0], (depth, D, 3 * D)),                 # fused Wq|Wk|Wv
        bqkv=jnp.zeros((depth, 1, 3 * D), jnp.float32),
        wo=w(ks[1], (depth, D, D)),
        bo=jnp.zeros((depth, 1, D), jnp.float32),
        ln2_g=jnp.ones((depth, 1, D), jnp.float32),
        ln2_b=jnp.zeros((depth, 1, D), jnp.float32),
        w1=w(ks[2], (depth, D, H4)),
        b1=jnp.zeros((depth, 1, H4), jnp.float32),
        w2=w(ks[3], (depth, H4, D)),
        b2=jnp.zeros((depth, 1, D), jnp.float32),
    )


if __name__ == "__main__":
    B, S, D, HEADS, DEPTH = 2, 8, 32, 4, 2
    key = jax.random.PRNGKey(0)
    kx, kp, kw = jax.random.split(key, 3)
    x = jax.random.normal(kx, (B, S, D), jnp.float32)
    pos = jax.random.normal(kp, (1, S, D), jnp.float32)
    params = init_params(kw, D, DEPTH)

    # Pad out the last key position of the second sequence.
    padding_mask = jnp.zeros((B, S), bool).at[1, -1].set(True)

    out = transformer_encoder(x, pos, params, HEADS, padding_mask=padding_mask)
    jax.block_until_ready(out)
    assert out.shape == (B, S, D) and bool(jnp.all(jnp.isfinite(out)))
    print("KERNEL_OK")
</pallas_src>

<mosaic_0001>
module attributes {stable_mosaic.version = 11 : i64} {
  func.func @kernel(%arg0: i32, %arg1: i32, %arg2: memref<2x8x32xf32, #tpu.memory_space<vmem>>, %arg3: memref<1x8x32xf32, #tpu.memory_space<vmem>>, %arg4: memref<2x1x8xf32, #tpu.memory_space<vmem>>, %arg5: memref<1x1x32xf32, #tpu.memory_space<vmem>>, %arg6: memref<1x1x32xf32, #tpu.memory_space<vmem>>, %arg7: memref<1x32x96xbf16, #tpu.memory_space<vmem>>, %arg8: memref<1x1x96xf32, #tpu.memory_space<vmem>>, %arg9: memref<1x32x32xbf16, #tpu.memory_space<vmem>>, %arg10: memref<1x1x32xf32, #tpu.memory_space<vmem>>, %arg11: memref<1x1x32xf32, #tpu.memory_space<vmem>>, %arg12: memref<1x1x32xf32, #tpu.memory_space<vmem>>, %arg13: memref<1x32x128xbf16, #tpu.memory_space<vmem>>, %arg14: memref<1x1x128xf32, #tpu.memory_space<vmem>>, %arg15: memref<1x128x32xbf16, #tpu.memory_space<vmem>>, %arg16: memref<1x1x32xf32, #tpu.memory_space<vmem>>, %arg17: memref<2x8x32xf32, #tpu.memory_space<vmem>>, %arg18: memref<16x32xf32, #tpu.memory_space<vmem>>, %arg19: memref<2x1x8xf32, #tpu.memory_space<vmem>>, %arg20: memref<2x4x8x8xbf16, #tpu.memory_space<vmem>>, %arg21: memref<2x4x8x8xbf16, #tpu.memory_space<vmem>>, %arg22: memref<2x4x8x8xbf16, #tpu.memory_space<vmem>>, %arg23: memref<2x4x8x8xbf16, #tpu.memory_space<vmem>>) attributes {dimension_semantics = [#tpu.dimension_semantics<parallel>, #tpu.dimension_semantics<arbitrary>], iteration_bounds = array<i64: 1, 2>, scalar_prefetch = 0 : i64, scratch_operands = 6 : i64, tpu.core_type = #tpu.core_type<tc>, window_params = [{transform_indices = @transform_0, window_bounds = array<i64: 2, 8, 32>}, {pipeline_mode = #tpu.pipeline_mode<synchronous>, transform_indices = @transform_1, window_bounds = array<i64: 1, 8, 32>}, {transform_indices = @transform_2, window_bounds = array<i64: 2, 1, 8>}, {transform_indices = @transform_3, window_bounds = array<i64: 1, 1, 32>}, {transform_indices = @transform_4, window_bounds = array<i64: 1, 1, 32>}, {transform_indices = @transform_5, window_bounds = array<i64: 1, 32, 96>}, {transform_indices = @transform_6, window_bounds = array<i64: 1, 1, 96>}, {transform_indices = @transform_7, window_bounds = array<i64: 1, 32, 32>}, {transform_indices = @transform_8, window_bounds = array<i64: 1, 1, 32>}, {transform_indices = @transform_9, window_bounds = array<i64: 1, 1, 32>}, {transform_indices = @transform_10, window_bounds = array<i64: 1, 1, 32>}, {transform_indices = @transform_11, window_bounds = array<i64: 1, 32, 128>}, {transform_indices = @transform_12, window_bounds = array<i64: 1, 1, 128>}, {transform_indices = @transform_13, window_bounds = array<i64: 1, 128, 32>}, {transform_indices = @transform_14, window_bounds = array<i64: 1, 1, 32>}, {transform_indices = @transform_15, window_bounds = array<i64: 2, 8, 32>}]} {
    %c0_i32 = arith.constant 0 : i32
    %0 = arith.cmpi eq, %arg1, %c0_i32 : i32
    %1 = arith.extui %0 : i1 to i32
    %c0_i32_0 = arith.constant 0 : i32
    %2 = arith.cmpi ne, %1, %c0_i32_0 : i32
    scf.if %2 {
      %c0_273 = arith.constant 0 : index
      %c0_274 = arith.constant 0 : index
      %c0_275 = arith.constant 0 : index
      %430 = vector.load %arg2[%c0_273, %c0_274, %c0_275] : memref<2x8x32xf32, #tpu.memory_space<vmem>>, vector<2x8x32xf32>
      %431 = vector.shape_cast %430 : vector<2x8x32xf32> to vector<16x32xf32>
      %c0_276 = arith.constant 0 : index
      %c0_277 = arith.constant 0 : index
      %432 = vector.load %arg18[%c0_276, %c0_277] : memref<16x32xf32, #tpu.memory_space<vmem>>, vector<16x32xf32>
      tpu.vector_store %arg18[%c0_276, %c0_277], %431 {strides = array<i32>} : memref<16x32xf32, #tpu.memory_space<vmem>>, vector<16x32xf32>,
      %c0_278 = arith.constant 0 : index
      %c0_279 = arith.constant 0 : index
      %c0_280 = arith.constant 0 : index
      %433 = vector.load %arg4[%c0_278, %c0_279, %c0_280] : memref<2x1x8xf32, #tpu.memory_space<vmem>>, vector<2x1x8xf32>
      %cst_281 = arith.constant 5.000000e-01 : f32
      %434 = vector.broadcast %cst_281 : f32 to vector<2x1x8xf32>
      %435 = arith.cmpf ogt, %433, %434 : vector<2x1x8xf32>
      %cst_282 = arith.constant -1.000000e+30 : f32
      %cst_283 = arith.constant 0.000000e+00 : f32
      %436 = vector.broadcast %cst_282 : f32 to vector<2x1x8xf32>
      %437 = vector.broadcast %cst_283 : f32 to vector<2x1x8xf32>
      %438 = arith.select %435, %436, %437 : vector<2x1x8xi1>, vector<2x1x8xf32>
      %c0_284 = arith.constant 0 : index
      %c0_285 = arith.constant 0 : index
      %c0_286 = arith.constant 0 : index
      %439 = vector.load %arg19[%c0_284, %c0_285, %c0_286] : memref<2x1x8xf32, #tpu.memory_space<vmem>>, vector<2x1x8xf32>
      tpu.vector_store %arg19[%c0_284, %c0_285, %c0_286], %438 {strides = array<i32>} : memref<2x1x8xf32, #tpu.memory_space<vmem>>, vector<2x1x8xf32>,
    } else {
    }
    %c0 = arith.constant 0 : index
    %c0_1 = arith.constant 0 : index
    %c0_2 = arith.constant 0 : index
    %3 = vector.load %arg3[%c0, %c0_1, %c0_2] : memref<1x8x32xf32, #tpu.memory_space<vmem>>, vector<1x8x32xf32>
    %4 = vector.shape_cast %3 : vector<1x8x32xf32> to vector<1x8x32xf32>
    %5 = vector.broadcast %4 : vector<1x8x32xf32> to vector<2x8x32xf32>
    %c0_3 = arith.constant 0 : index
    %c0_4 = arith.constant 0 : index
    %6 = vector.load %arg18[%c0_3, %c0_4] : memref<16x32xf32, #tpu.memory_space<vmem>>, vector<16x32xf32>
    %7 = vector.shape_cast %5 : vector<2x8x32xf32> to vector<16x32xf32>
    %8 = arith.addf %6, %7 : vector<16x32xf32>
    %c0_5 = arith.constant 0 : index
    %c0_6 = arith.constant 0 : index
    %c0_7 = arith.constant 0 : index
    %9 = vector.load %arg5[%c0_5, %c0_6, %c0_7] : memref<1x1x32xf32, #tpu.memory_space<vmem>>, vector<1x1x32xf32>
    %10 = vector.shape_cast %9 : vector<1x1x32xf32> to vector<1x32xf32>
    %c0_8 = arith.constant 0 : index
    %c0_9 = arith.constant 0 : index
    %c0_10 = arith.constant 0 : index
    %11 = vector.load %arg6[%c0_8, %c0_9, %c0_10] : memref<1x1x32xf32, #tpu.memory_space<vmem>>, vector<1x1x32xf32>
    %12 = vector.shape_cast %11 : vector<1x1x32xf32> to vector<1x32xf32>
    %cst = arith.constant dense<0.000000e+00> : vector<16xf32>
    %13 = vector.multi_reduction <add>, %8, %cst [1] : vector<16x32xf32> to vector<16xf32>
    %14 = vector.shape_cast %13 : vector<16xf32> to vector<16x1xf32>
    %cst_11 = arith.constant 3.200000e+01 : f32
    %15 = vector.broadcast %cst_11 : f32 to vector<16x1xf32>
    %16 = arith.divf %14, %15 : vector<16x1xf32>
    %17 = vector.broadcast %16 : vector<16x1xf32> to vector<16x32xf32>
    %18 = arith.subf %8, %17 : vector<16x32xf32>
    %19 = arith.mulf %18, %18 : vector<16x32xf32>
    %cst_12 = arith.constant dense<0.000000e+00> : vector<16xf32>
    %20 = vector.multi_reduction <add>, %19, %cst_12 [1] : vector<16x32xf32> to vector<16xf32>
    %21 = vector.shape_cast %20 : vector<16xf32> to vector<16x1xf32>
    %cst_13 = arith.constant 3.200000e+01 : f32
    %22 = vector.broadcast %cst_13 : f32 to vector<16x1xf32>
    %23 = arith.divf %21, %22 : vector<16x1xf32>
    %24 = vector.broadcast %16 : vector<16x1xf32> to vector<16x32xf32>
    %25 = arith.subf %8, %24 : vector<16x32xf32>
    %cst_14 = arith.constant 9.99999974E-6 : f32
    %26 = vector.broadcast %cst_14 : f32 to vector<16x1xf32>
    %27 = arith.addf %23, %26 : vector<16x1xf32>
    %28 = math.rsqrt %27 : vector<16x1xf32>
    %29 = vector.broadcast %28 : vector<16x1xf32> to vector<16x32xf32>
    %30 = arith.mulf %25, %29 : vector<16x32xf32>
    %31 = vector.broadcast %10 : vector<1x32xf32> to vector<16x32xf32>
    %32 = arith.mulf %30, %31 : vector<16x32xf32>
    %33 = vector.broadcast %12 : vector<1x32xf32> to vector<16x32xf32>
    %34 = arith.addf %32, %33 : vector<16x32xf32>
    %35 = arith.truncf %34 : vector<16x32xf32> to vector<16x32xbf16>
    %c0_15 = arith.constant 0 : index
    %c0_16 = arith.constant 0 : index
    %c0_17 = arith.constant 0 : index
    %36 = vector.load %arg7[%c0_15, %c0_16, %c0_17] : memref<1x32x96xbf16, #tpu.memory_space<vmem>>, vector<1x32x96xbf16>
    %37 = vector.shape_cast %36 : vector<1x32x96xbf16> to vector<32x96xbf16>
    %cst_18 = arith.constant dense<0.000000e+00> : vector<16x96xf32>
    %38 = tpu.matmul %35, %37, %cst_18 {dimension_numbers = #tpu.dot_dimension_numbers<[1], [0], [0], [1], [0, 0, 1, 1], [], []>} : vector<16x32xbf16>, vector<32x96xbf16>, vector<16x96xf32> -> vector<16x96xf32>
    %c0_19 = arith.constant 0 : index
    %c0_20 = arith.constant 0 : index
    %c0_21 = arith.constant 0 : index
    %39 = vector.load %arg8[%c0_19, %c0_20, %c0_21] : memref<1x1x96xf32, #tpu.memory_space<vmem>>, vector<1x1x96xf32>
    %40 = vector.shape_cast %39 : vector<1x1x96xf32> to vector<1x96xf32>
    %41 = vector.broadcast %40 : vector<1x96xf32> to vector<16x96xf32>
    %42 = arith.addf %38, %41 : vector<16x96xf32>
    %43 = vector.extract_strided_slice %42 {offsets = [0, 0], sizes = [16, 32], strides = [1, 1]} : vector<16x96xf32> to vector<16x32xf32>
    %cst_22 = arith.constant 0.353553385 : f32
    %44 = vector.broadcast %cst_22 : f32 to vector<16x32xf32>
    %45 = arith.mulf %43, %44 : vector<16x32xf32>
    %46 = arith.truncf %45 : vector<16x32xf32> to vector<16x32xbf16>
    %47 = vector.shape_cast %46 : vector<16x32xbf16> to vector<2x8x32xbf16>
    %48 = vector.extract_strided_slice %42 {offsets = [0, 32], sizes = [16, 32], strides = [1, 1]} : vector<16x96xf32> to vector<16x32xf32>
    %49 = arith.truncf %48 : vector<16x32xf32> to vector<16x32xbf16>
    %50 = vector.shape_cast %49 : vector<16x32xbf16> to vector<2x8x32xbf16>
    %51 = vector.extract_strided_slice %42 {offsets = [0, 64], sizes = [16, 32], strides = [1, 1]} : vector<16x96xf32> to vector<16x32xf32>
    %52 = arith.truncf %51 : vector<16x32xf32> to vector<16x32xbf16>
    %53 = vector.shape_cast %52 : vector<16x32xbf16> to vector<2x8x32xbf16>
    %54 = vector.extract_strided_slice %47 {offsets = [0, 0, 0], sizes = [2, 8, 8], strides = [1, 1, 1]} : vector<2x8x32xbf16> to vector<2x8x8xbf16>
    %c0_23 = arith.constant 0 : index
    %c0_24 = arith.constant 0 : index
    %c0_25 = arith.constant 0 : index
    %c0_26 = arith.constant 0 : index
    %55 = vector.load %arg20[%c0_23, %c0_24, %c0_25, %c0_26] : memref<2x4x8x8xbf16, #tpu.memory_space<vmem>>, vector<2x1x8x8xbf16>
    %56 = vector.shape_cast %55 : vector<2x1x8x8xbf16> to vector<2x8x8xbf16>
    %57 = vector.shape_cast %54 : vector<2x8x8xbf16> to vector<2x1x8x8xbf16>
    tpu.vector_store %arg20[%c0_23, %c0_24, %c0_25, %c0_26], %57 {strides = array<i32>} : memref<2x4x8x8xbf16, #tpu.memory_space<vmem>>, vector<2x1x8x8xbf16>,
    %58 = vector.extract_strided_slice %50 {offsets = [0, 0, 0], sizes = [2, 8, 8], strides = [1, 1, 1]} : vector<2x8x32xbf16> to vector<2x8x8xbf16>
    %c0_27 = arith.constant 0 : index
    %c0_28 = arith.constant 0 : index
    %c0_29 = arith.constant 0 : index
    %c0_30 = arith.constant 0 : index
    %59 = vector.load %arg21[%c0_27, %c0_28, %c0_29, %c0_30] : memref<2x4x8x8xbf16, #tpu.memory_space<vmem>>, vector<2x1x8x8xbf16>
    %60 = vector.shape_cast %59 : vector<2x1x8x8xbf16> to vector<2x8x8xbf16>
    %61 = vector.shape_cast %58 : vector<2x8x8xbf16> to vector<2x1x8x8xbf16>
    tpu.vector_store %arg21[%c0_27, %c0_28, %c0_29, %c0_30], %61 {strides = array<i32>} : memref<2x4x8x8xbf16, #tpu.memory_space<vmem>>, vector<2x1x8x8xbf16>,
    %62 = vector.extract_strided_slice %53 {offsets = [0, 0, 0], sizes = [2, 8, 8], strides = [1, 1, 1]} : vector<2x8x32xbf16> to vector<2x8x8xbf16>
    %c0_31 = arith.constant 0 : index
    %c0_32 = arith.constant 0 : index
    %c0_33 = arith.constant 0 : index
    %c0_34 = arith.constant 0 : index
    %63 = vector.load %arg22[%c0_31, %c0_32, %c0_33, %c0_34] : memref<2x4x8x8xbf16, #tpu.memory_space<vmem>>, vector<2x1x8x8xbf16>
    %64 = vector.shape_cast %63 : vector<2x1x8x8xbf16> to vector<2x8x8xbf16>
    %65 = vector.shape_cast %62 : vector<2x8x8xbf16> to vector<2x1x8x8xbf16>
    tpu.vector_store %arg22[%c0_31, %c0_32, %c0_33, %c0_34], %65 {strides = array<i32>} : memref<2x4x8x8xbf16, #tpu.memory_space<vmem>>, vector<2x1x8x8xbf16>,
    %66 = vector.extract_strided_slice %47 {offsets = [0, 0, 8], sizes = [2, 8, 8], strides = [1, 1, 1]} : vector<2x8x32xbf16> to vector<2x8x8xbf16>
    %c0_35 = arith.constant 0 : index
    %c1 = arith.constant 1 : index
    %c0_36 = arith.constant 0 : index
    %c0_37 = arith.constant 0 : index
    %67 = vector.load %arg20[%c0_35, %c1, %c0_36, %c0_37] : memref<2x4x8x8xbf16, #tpu.memory_space<vmem>>, vector<2x1x8x8xbf16>
    %68 = vector.shape_cast %67 : vector<2x1x8x8xbf16> to vector<2x8x8xbf16>
    %69 = vector.shape_cast %66 : vector<2x8x8xbf16> to vector<2x1x8x8xbf16>
    tpu.vector_store %arg20[%c0_35, %c1, %c0_36, %c0_37], %69 {strides = array<i32>} : memref<2x4x8x8xbf16, #tpu.memory_space<vmem>>, vector<2x1x8x8xbf16>,
    %70 = vector.extract_strided_slice %50 {offsets = [0, 0, 8], sizes = [2, 8, 8], strides = [1, 1, 1]} : vector<2x8x32xbf16> to vector<2x8x8xbf16>
    %c0_38 = arith.constant 0 : index
    %c1_39 = arith.constant 1 : index
    %c0_40 = arith.constant 0 : index
    %c0_41 = arith.constant 0 : index
    %71 = vector.load %arg21[%c0_38, %c1_39, %c0_40, %c0_41] : memref<2x4x8x8xbf16, #tpu.memory_space<vmem>>, vector<2x1x8x8xbf16>
    %72 = vector.shape_cast %71 : vector<2x1x8x8xbf16> to vector<2x8x8xbf16>
    %73 = vector.shape_cast %70 : vector<2x8x8xbf16> to vector<2x1x8x8xbf16>
    tpu.vector_store %arg21[%c0_38, %c1_39, %c0_40, %c0_41], %73 {strides = array<i32>} : memref<2x4x8x8xbf16, #tpu.memory_space<vmem>>, vector<2x1x8x8xbf16>,
    %74 = vector.extract_strided_slice %53 {offsets = [0, 0, 8], sizes = [2, 8, 8], strides = [1, 1, 1]} : vector<2x8x32xbf16> to vector<2x8x8xbf16>
    %c0_42 = arith.constant 0 : index
    %c1_43 = arith.constant 1 : index
    %c0_44 = arith.constant 0 : index
    %c0_45 = arith.constant 0 : index
    %75 = vector.load %arg22[%c0_42, %c1_43, %c0_44, %c0_45] : memref<2x4x8x8xbf16, #tpu.memory_space<vmem>>, vector<2x1x8x8xbf16>
    %76 = vector.shape_cast %75 : vector<2x1x8x8xbf16> to vector<2x8x8xbf16>
    %77 = vector.shape_cast %74 : vector<2x8x8xbf16> to vector<2x1x8x8xbf16>
    tpu.vector_store %arg22[%c0_42, %c1_43, %c0_44, %c0_45], %77 {strides = array<i32>} : memref<2x4x8x8xbf16, #tpu.memory_space<vmem>>, vector<2x1x8x8xbf16>,
    %78 = vector.extract_strided_slice %47 {offsets = [0, 0, 16], sizes = [2, 8, 8], strides = [1, 1, 1]} : vector<2x8x32xbf16> to vector<2x8x8xbf16>
    %c0_46 = arith.constant 0 : index
    %c2 = arith.constant 2 : index
    %c0_47 = arith.constant 0 : index
    %c0_48 = arith.constant 0 : index
    %79 = vector.load %arg20[%c0_46, %c2, %c0_47, %c0_48] : memref<2x4x8x8xbf16, #tpu.memory_space<vmem>>, vector<2x1x8x8xbf16>
    %80 = vector.shape_cast %79 : vector<2x1x8x8xbf16> to vector<2x8x8xbf16>
    %81 = vector.shape_cast %78 : vector<2x8x8xbf16> to vector<2x1x8x8xbf16>
    tpu.vector_store %arg20[%c0_46, %c2, %c0_47, %c0_48], %81 {strides = array<i32>} : memref<2x4x8x8xbf16, #tpu.memory_space<vmem>>, vector<2x1x8x8xbf16>,
    %82 = vector.extract_strided_slice %50 {offsets = [0, 0, 16], sizes = [2, 8, 8], strides = [1, 1, 1]} : vector<2x8x32xbf16> to vector<2x8x8xbf16>
    %c0_49 = arith.constant 0 : index
    %c2_50 = arith.constant 2 : index
    %c0_51 = arith.constant 0 : index
    %c0_52 = arith.constant 0 : index
    %83 = vector.load %arg21[%c0_49, %c2_50, %c0_51, %c0_52] : memref<2x4x8x8xbf16, #tpu.memory_space<vmem>>, vector<2x1x8x8xbf16>
    %84 = vector.shape_cast %83 : vector<2x1x8x8xbf16> to vector<2x8x8xbf16>
    %85 = vector.shape_cast %82 : vector<2x8x8xbf16> to vector<2x1x8x8xbf16>
    tpu.vector_store %arg21[%c0_49, %c2_50, %c0_51, %c0_52], %85 {strides = array<i32>} : memref<2x4x8x8xbf16, #tpu.memory_space<vmem>>, vector<2x1x8x8xbf16>,
    %86 = vector.extract_strided_slice %53 {offsets = [0, 0, 16], sizes = [2, 8, 8], strides = [1, 1, 1]} : vector<2x8x32xbf16> to vector<2x8x8xbf16>
    %c0_53 = arith.constant 0 : index
    %c2_54 = arith.constant 2 : index
    %c0_55 = arith.constant 0 : index
    %c0_56 = arith.constant 0 : index
    %87 = vector.load %arg22[%c0_53, %c2_54, %c0_55, %c0_56] : memref<2x4x8x8xbf16, #tpu.memory_space<vmem>>, vector<2x1x8x8xbf16>
    %88 = vector.shape_cast %87 : vector<2x1x8x8xbf16> to vector<2x8x8xbf16>
    %89 = vector.shape_cast %86 : vector<2x8x8xbf16> to vector<2x1x8x8xbf16>
    tpu.vector_store %arg22[%c0_53, %c2_54, %c0_55, %c0_56], %89 {strides = array<i32>} : memref<2x4x8x8xbf16, #tpu.memory_space<vmem>>, vector<2x1x8x8xbf16>,
    %90 = vector.extract_strided_slice %47 {offsets = [0, 0, 24], sizes = [2, 8, 8], strides = [1, 1, 1]} : vector<2x8x32xbf16> to vector<2x8x8xbf16>
    %c0_57 = arith.constant 0 : index
    %c3 = arith.constant 3 : index
    %c0_58 = arith.constant 0 : index
    %c0_59 = arith.constant 0 : index
    %91 = vector.load %arg20[%c0_57, %c3, %c0_58, %c0_59] : memref<2x4x8x8xbf16, #tpu.memory_space<vmem>>, vector<2x1x8x8xbf16>
    %92 = vector.shape_cast %91 : vector<2x1x8x8xbf16> to vector<2x8x8xbf16>
    %93 = vector.shape_cast %90 : vector<2x8x8xbf16> to vector<2x1x8x8xbf16>
    tpu.vector_store %arg20[%c0_57, %c3, %c0_58, %c0_59], %93 {strides = array<i32>} : memref<2x4x8x8xbf16, #tpu.memory_space<vmem>>, vector<2x1x8x8xbf16>,
    %94 = vector.extract_strided_slice %50 {offsets = [0, 0, 24], sizes = [2, 8, 8], strides = [1, 1, 1]} : vector<2x8x32xbf16> to vector<2x8x8xbf16>
    %c0_60 = arith.constant 0 : index
    %c3_61 = arith.constant 3 : index
    %c0_62 = arith.constant 0 : index
    %c0_63 = arith.constant 0 : index
    %95 = vector.load %arg21[%c0_60, %c3_61, %c0_62, %c0_63] : memref<2x4x8x8xbf16, #tpu.memory_space<vmem>>, vector<2x1x8x8xbf16>
    %96 = vector.shape_cast %95 : vector<2x1x8x8xbf16> to vector<2x8x8xbf16>
    %97 = vector.shape_cast %94 : vector<2x8x8xbf16> to vector<2x1x8x8xbf16>
    tpu.vector_store %arg21[%c0_60, %c3_61, %c0_62, %c0_63], %97 {strides = array<i32>} : memref<2x4x8x8xbf16, #tpu.memory_space<vmem>>, vector<2x1x8x8xbf16>,
    %98 = vector.extract_strided_slice %53 {offsets = [0, 0, 24], sizes = [2, 8, 8], strides = [1, 1, 1]} : vector<2x8x32xbf16> to vector<2x8x8xbf16>
    %c0_64 = arith.constant 0 : index
    %c3_65 = arith.constant 3 : index
    %c0_66 = arith.constant 0 : index
    %c0_67 = arith.constant 0 : index
    %99 = vector.load %arg22[%c0_64, %c3_65, %c0_66, %c0_67] : memref<2x4x8x8xbf16, #tpu.memory_space<vmem>>, vector<2x1x8x8xbf16>
    %100 = vector.shape_cast %99 : vector<2x1x8x8xbf16> to vector<2x8x8xbf16>
    %101 = vector.shape_cast %98 : vector<2x8x8xbf16> to vector<2x1x8x8xbf16>
    tpu.vector_store %arg22[%c0_64, %c3_65, %c0_66, %c0_67], %101 {strides = array<i32>} : memref<2x4x8x8xbf16, #tpu.memory_space<vmem>>, vector<2x1x8x8xbf16>,
    %c0_68 = arith.constant 0 : index
    %c0_69 = arith.constant 0 : index
    %c0_70 = arith.constant 0 : index
    %102 = vector.load %arg19[%c0_68, %c0_69, %c0_70] : memref<2x1x8xf32, #tpu.memory_space<vmem>>, vector<1x1x8xf32>
    %103 = vector.shape_cast %102 : vector<1x1x8xf32> to vector<1x8xf32>
    %c0_i32_71 = arith.constant 0 : i32
    %c0_72 = arith.constant 0 : index
    %104 = arith.index_cast %c0_i32_71 : i32 to index
    %c0_73 = arith.constant 0 : index
    %c0_74 = arith.constant 0 : index
    %105 = vector.load %arg20[%c0_72, %104, %c0_73, %c0_74] : memref<2x4x8x8xbf16, #tpu.memory_space<vmem>>, vector<1x1x8x8xbf16>
    %106 = vector.shape_cast %105 : vector<1x1x8x8xbf16> to vector<8x8xbf16>
    %c0_75 = arith.constant 0 : index
    %107 = arith.index_cast %c0_i32_71 : i32 to index
    %c0_76 = arith.constant 0 : index
    %c0_77 = arith.constant 0 : index
    %108 = vector.load %arg21[%c0_75, %107, %c0_76, %c0_77] : memref<2x4x8x8xbf16, #tpu.memory_space<vmem>>, vector<1x1x8x8xbf16>
    %109 = vector.shape_cast %108 : vector<1x1x8x8xbf16> to vector<8x8xbf16>
    %c0_78 = arith.constant 0 : index
    %110 = arith.index_cast %c0_i32_71 : i32 to index
    %c0_79 = arith.constant 0 : index
    %c0_80 = arith.constant 0 : index
    %111 = vector.load %arg22[%c0_78, %110, %c0_79, %c0_80] : memref<2x4x8x8xbf16, #tpu.memory_space<vmem>>, vector<1x1x8x8xbf16>
    %112 = vector.shape_cast %111 : vector<1x1x8x8xbf16> to vector<8x8xbf16>
    %cst_81 = arith.constant dense<0.000000e+00> : vector<8x8xf32>
    %113 = tpu.matmul %106, %109, %cst_81 {dimension_numbers = #tpu.dot_dimension_numbers<[1], [1], [0], [0], [0, 0, 1, 0], [], []>} : vector<8x8xbf16>, vector<8x8xbf16>, vector<8x8xf32> -> vector<8x8xf32>
    %114 = vector.broadcast %103 : vector<1x8xf32> to vector<8x8xf32>
    %115 = arith.addf %113, %114 : vector<8x8xf32>
    %cst_82 = arith.constant dense<0xFF800000> : vector<8xf32>
    %116 = vector.multi_reduction <maximumf>, %115, %cst_82 [1] : vector<8x8xf32> to vector<8xf32>
    %117 = vector.shape_cast %116 : vector<8xf32> to vector<8x1xf32>
    %118 = vector.broadcast %117 : vector<8x1xf32> to vector<8x8xf32>
    %119 = arith.subf %115, %118 : vector<8x8xf32>
    %120 = math.exp %119 : vector<8x8xf32>
    %cst_83 = arith.constant dense<0.000000e+00> : vector<8xf32>
    %121 = vector.multi_reduction <add>, %120, %cst_83 [1] : vector<8x8xf32> to vector<8xf32>
    %122 = vector.shape_cast %121 : vector<8xf32> to vector<8x1xf32>
    %123 = tpu.reciprocal %122 {approx = true} : vector<8x1xf32> -> vector<8x1xf32>
    %124 = arith.truncf %120 : vector<8x8xf32> to vector<8x8xbf16>
    %cst_84 = arith.constant dense<0.000000e+00> : vector<8x8xf32>
    %125 = tpu.matmul %124, %112, %cst_84 {dimension_numbers = #tpu.dot_dimension_numbers<[1], [0], [0], [1], [0, 0, 1, 1], [], []>} : vector<8x8xbf16>, vector<8x8xbf16>, vector<8x8xf32> -> vector<8x8xf32>
    %126 = vector.broadcast %123 : vector<8x1xf32> to vector<8x8xf32>
    %127 = arith.mulf %125, %126 : vector<8x8xf32>
    %128 = arith.truncf %127 : vector<8x8xf32> to vector<8x8xbf16>
    %c0_85 = arith.constant 0 : index
    %129 = arith.index_cast %c0_i32_71 : i32 to index
    %c0_86 = arith.constant 0 : index
    %c0_87 = arith.constant 0 : index
    %130 = vector.load %arg23[%c0_85, %129, %c0_86, %c0_87] : memref<2x4x8x8xbf16, #tpu.memory_space<vmem>>, vector<1x1x8x8xbf16>
    %131 = vector.shape_cast %130 : vector<1x1x8x8xbf16> to vector<8x8xbf16>
    %132 = vector.shape_cast %128 : vector<8x8xbf16> to vector<1x1x8x8xbf16>
    tpu.vector_store %arg23[%c0_85, %129, %c0_86, %c0_87], %132 {strides = array<i32>} : memref<2x4x8x8xbf16, #tpu.memory_space<vmem>>, vector<1x1x8x8xbf16>,
    %c1_i32 = arith.constant 1 : i32
    %c0_88 = arith.constant 0 : index
    %133 = arith.index_cast %c1_i32 : i32 to index
    %c0_89 = arith.constant 0 : index
    %c0_90 = arith.constant 0 : index
    %134 = vector.load %arg20[%c0_88, %133, %c0_89, %c0_90] : memref<2x4x8x8xbf16, #tpu.memory_space<vmem>>, vector<1x1x8x8xbf16>
    %135 = vector.shape_cast %134 : vector<1x1x8x8xbf16> to vector<8x8xbf16>
    %c0_91 = arith.constant 0 : index
    %136 = arith.index_cast %c1_i32 : i32 to index
    %c0_92 = arith.constant 0 : index
    %c0_93 = arith.constant 0 : index
    %137 = vector.load %arg21[%c0_91, %136, %c0_92, %c0_93] : memref<2x4x8x8xbf16, #tpu.memory_space<vmem>>, vector<1x1x8x8xbf16>
    %138 = vector.shape_cast %137 : vector<1x1x8x8xbf16> to vector<8x8xbf16>
    %c0_94 = arith.constant 0 : index
    %139 = arith.index_cast %c1_i32 : i32 to index
    %c0_95 = arith.constant 0 : index
    %c0_96 = arith.constant 0 : index
    %140 = vector.load %arg22[%c0_94, %139, %c0_95, %c0_96] : memref<2x4x8x8xbf16, #tpu.memory_space<vmem>>, vector<1x1x8x8xbf16>
    %141 = vector.shape_cast %140 : vector<1x1x8x8xbf16> to vector<8x8xbf16>
    %cst_97 = arith.constant dense<0.000000e+00> : vector<8x8xf32>
    %142 = tpu.matmul %135, %138, %cst_97 {dimension_numbers = #tpu.dot_dimension_numbers<[1], [1], [0], [0], [0, 0, 1, 0], [], []>} : vector<8x8xbf16>, vector<8x8xbf16>, vector<8x8xf32> -> vector<8x8xf32>
    %143 = vector.broadcast %103 : vector<1x8xf32> to vector<8x8xf32>
    %144 = arith.addf %142, %143 : vector<8x8xf32>
    %cst_98 = arith.constant dense<0xFF800000> : vector<8xf32>
    %145 = vector.multi_reduction <maximumf>, %144, %cst_98 [1] : vector<8x8xf32> to vector<8xf32>
    %146 = vector.shape_cast %145 : vector<8xf32> to vector<8x1xf32>
    %147 = vector.broadcast %146 : vector<8x1xf32> to vector<8x8xf32>
    %148 = arith.subf %144, %147 : vector<8x8xf32>
    %149 = math.exp %148 : vector<8x8xf32>
    %cst_99 = arith.constant dense<0.000000e+00> : vector<8xf32>
    %150 = vector.multi_reduction <add>, %149, %cst_99 [1] : vector<8x8xf32> to vector<8xf32>
    %151 = vector.shape_cast %150 : vector<8xf32> to vector<8x1xf32>
    %152 = tpu.reciprocal %151 {approx = true} : vector<8x1xf32> -> vector<8x1xf32>
    %153 = arith.truncf %149 : vector<8x8xf32> to vector<8x8xbf16>
    %cst_100 = arith.constant dense<0.000000e+00> : vector<8x8xf32>
    %154 = tpu.matmul %153, %141, %cst_100 {dimension_numbers = #tpu.dot_dimension_numbers<[1], [0], [0], [1], [0, 0, 1, 1], [], []>} : vector<8x8xbf16>, vector<8x8xbf16>, vector<8x8xf32> -> vector<8x8xf32>
    %155 = vector.broadcast %152 : vector<8x1xf32> to vector<8x8xf32>
    %156 = arith.mulf %154, %155 : vector<8x8xf32>
    %157 = arith.truncf %156 : vector<8x8xf32> to vector<8x8xbf16>
    %c0_101 = arith.constant 0 : index
    %158 = arith.index_cast %c1_i32 : i32 to index
    %c0_102 = arith.constant 0 : index
    %c0_103 = arith.constant 0 : index
    %159 = vector.load %arg23[%c0_101, %158, %c0_102, %c0_103] : memref<2x4x8x8xbf16, #tpu.memory_space<vmem>>, vector<1x1x8x8xbf16>
    %160 = vector.shape_cast %159 : vector<1x1x8x8xbf16> to vector<8x8xbf16>
    %161 = vector.shape_cast %157 : vector<8x8xbf16> to vector<1x1x8x8xbf16>
    tpu.vector_store %arg23[%c0_101, %158, %c0_102, %c0_103], %161 {strides = array<i32>} : memref<2x4x8x8xbf16, #tpu.memory_space<vmem>>, vector<1x1x8x8xbf16>,
    %c2_i32 = arith.constant 2 : i32
    %c0_104 = arith.constant 0 : index
    %162 = arith.index_cast %c2_i32 : i32 to index
    %c0_105 = arith.constant 0 : index
    %c0_106 = arith.constant 0 : index
    %163 = vector.load %arg20[%c0_104, %162, %c0_105, %c0_106] : memref<2x4x8x8xbf16, #tpu.memory_space<vmem>>, vector<1x1x8x8xbf16>
    %164 = vector.shape_cast %163 : vector<1x1x8x8xbf16> to vector<8x8xbf16>
    %c0_107 = arith.constant 0 : index
    %165 = arith.index_cast %c2_i32 : i32 to index
    %c0_108 = arith.constant 0 : index
    %c0_109 = arith.constant 0 : index
    %166 = vector.load %arg21[%c0_107, %165, %c0_108, %c0_109] : memref<2x4x8x8xbf16, #tpu.memory_space<vmem>>, vector<1x1x8x8xbf16>
    %167 = vector.shape_cast %166 : vector<1x1x8x8xbf16> to vector<8x8xbf16>
    %c0_110 = arith.constant 0 : index
    %168 = arith.index_cast %c2_i32 : i32 to index
    %c0_111 = arith.constant 0 : index
    %c0_112 = arith.constant 0 : index
    %169 = vector.load %arg22[%c0_110, %168, %c0_111, %c0_112] : memref<2x4x8x8xbf16, #tpu.memory_space<vmem>>, vector<1x1x8x8xbf16>
    %170 = vector.shape_cast %169 : vector<1x1x8x8xbf16> to vector<8x8xbf16>
    %cst_113 = arith.constant dense<0.000000e+00> : vector<8x8xf32>
    %171 = tpu.matmul %164, %167, %cst_113 {dimension_numbers = #tpu.dot_dimension_numbers<[1], [1], [0], [0], [0, 0, 1, 0], [], []>} : vector<8x8xbf16>, vector<8x8xbf16>, vector<8x8xf32> -> vector<8x8xf32>
    %172 = vector.broadcast %103 : vector<1x8xf32> to vector<8x8xf32>
    %173 = arith.addf %171, %172 : vector<8x8xf32>
    %cst_114 = arith.constant dense<0xFF800000> : vector<8xf32>
    %174 = vector.multi_reduction <maximumf>, %173, %cst_114 [1] : vector<8x8xf32> to vector<8xf32>
    %175 = vector.shape_cast %174 : vector<8xf32> to vector<8x1xf32>
    %176 = vector.broadcast %175 : vector<8x1xf32> to vector<8x8xf32>
    %177 = arith.subf %173, %176 : vector<8x8xf32>
    %178 = math.exp %177 : vector<8x8xf32>
    %cst_115 = arith.constant dense<0.000000e+00> : vector<8xf32>
    %179 = vector.multi_reduction <add>, %178, %cst_115 [1] : vector<8x8xf32> to vector<8xf32>
    %180 = vector.shape_cast %179 : vector<8xf32> to vector<8x1xf32>
    %181 = tpu.reciprocal %180 {approx = true} : vector<8x1xf32> -> vector<8x1xf32>
    %182 = arith.truncf %178 : vector<8x8xf32> to vector<8x8xbf16>
    %cst_116 = arith.constant dense<0.000000e+00> : vector<8x8xf32>
    %183 = tpu.matmul %182, %170, %cst_116 {dimension_numbers = #tpu.dot_dimension_numbers<[1], [0], [0], [1], [0, 0, 1, 1], [], []>} : vector<8x8xbf16>, vector<8x8xbf16>, vector<8x8xf32> -> vector<8x8xf32>
    %184 = vector.broadcast %181 : vector<8x1xf32> to vector<8x8xf32>
    %185 = arith.mulf %183, %184 : vector<8x8xf32>
    %186 = arith.truncf %185 : vector<8x8xf32> to vector<8x8xbf16>
    %c0_117 = arith.constant 0 : index
    %187 = arith.index_cast %c2_i32 : i32 to index
    %c0_118 = arith.constant 0 : index
    %c0_119 = arith.constant 0 : index
    %188 = vector.load %arg23[%c0_117, %187, %c0_118, %c0_119] : memref<2x4x8x8xbf16, #tpu.memory_space<vmem>>, vector<1x1x8x8xbf16>
    %189 = vector.shape_cast %188 : vector<1x1x8x8xbf16> to vector<8x8xbf16>
    %190 = vector.shape_cast %186 : vector<8x8xbf16> to vector<1x1x8x8xbf16>
    tpu.vector_store %arg23[%c0_117, %187, %c0_118, %c0_119], %190 {strides = array<i32>} : memref<2x4x8x8xbf16, #tpu.memory_space<vmem>>, vector<1x1x8x8xbf16>,
    %c3_i32 = arith.constant 3 : i32
    %c0_120 = arith.constant 0 : index
    %191 = arith.index_cast %c3_i32 : i32 to index
    %c0_121 = arith.constant 0 : index
    %c0_122 = arith.constant 0 : index
    %192 = vector.load %arg20[%c0_120, %191, %c0_121, %c0_122] : memref<2x4x8x8xbf16, #tpu.memory_space<vmem>>, vector<1x1x8x8xbf16>
    %193 = vector.shape_cast %192 : vector<1x1x8x8xbf16> to vector<8x8xbf16>
    %c0_123 = arith.constant 0 : index
    %194 = arith.index_cast %c3_i32 : i32 to index
    %c0_124 = arith.constant 0 : index
    %c0_125 = arith.constant 0 : index
    %195 = vector.load %arg21[%c0_123, %194, %c0_124, %c0_125] : memref<2x4x8x8xbf16, #tpu.memory_space<vmem>>, vector<1x1x8x8xbf16>
    %196 = vector.shape_cast %195 : vector<1x1x8x8xbf16> to vector<8x8xbf16>
    %c0_126 = arith.constant 0 : index
    %197 = arith.index_cast %c3_i32 : i32 to index
    %c0_127 = arith.constant 0 : index
    %c0_128 = arith.constant 0 : index
    %198 = vector.load %arg22[%c0_126, %197, %c0_127, %c0_128] : memref<2x4x8x8xbf16, #tpu.memory_space<vmem>>, vector<1x1x8x8xbf16>
    %199 = vector.shape_cast %198 : vector<1x1x8x8xbf16> to vector<8x8xbf16>
    %cst_129 = arith.constant dense<0.000000e+00> : vector<8x8xf32>
    %200 = tpu.matmul %193, %196, %cst_129 {dimension_numbers = #tpu.dot_dimension_numbers<[1], [1], [0], [0], [0, 0, 1, 0], [], []>} : vector<8x8xbf16>, vector<8x8xbf16>, vector<8x8xf32> -> vector<8x8xf32>
    %201 = vector.broadcast %103 : vector<1x8xf32> to vector<8x8xf32>
    %202 = arith.addf %200, %201 : vector<8x8xf32>
    %cst_130 = arith.constant dense<0xFF800000> : vector<8xf32>
    %203 = vector.multi_reduction <maximumf>, %202, %cst_130 [1] : vector<8x8xf32> to vector<8xf32>
    %204 = vector.shape_cast %203 : vector<8xf32> to vector<8x1xf32>
    %205 = vector.broadcast %204 : vector<8x1xf32> to vector<8x8xf32>
    %206 = arith.subf %202, %205 : vector<8x8xf32>
    %207 = math.exp %206 : vector<8x8xf32>
    %cst_131 = arith.constant dense<0.000000e+00> : vector<8xf32>
    %208 = vector.multi_reduction <add>, %207, %cst_131 [1] : vector<8x8xf32> to vector<8xf32>
    %209 = vector.shape_cast %208 : vector<8xf32> to vector<8x1xf32>
    %210 = tpu.reciprocal %209 {approx = true} : vector<8x1xf32> -> vector<8x1xf32>
    %211 = arith.truncf %207 : vector<8x8xf32> to vector<8x8xbf16>
    %cst_132 = arith.constant dense<0.000000e+00> : vector<8x8xf32>
    %212 = tpu.matmul %211, %199, %cst_132 {dimension_numbers = #tpu.dot_dimension_numbers<[1], [0], [0], [1], [0, 0, 1, 1], [], []>} : vector<8x8xbf16>, vector<8x8xbf16>, vector<8x8xf32> -> vector<8x8xf32>
    %213 = vector.broadcast %210 : vector<8x1xf32> to vector<8x8xf32>
    %214 = arith.mulf %212, %213 : vector<8x8xf32>
    %215 = arith.truncf %214 : vector<8x8xf32> to vector<8x8xbf16>
    %c0_133 = arith.constant 0 : index
    %216 = arith.index_cast %c3_i32 : i32 to index
    %c0_134 = arith.constant 0 : index
    %c0_135 = arith.constant 0 : index
    %217 = vector.load %arg23[%c0_133, %216, %c0_134, %c0_135] : memref<2x4x8x8xbf16, #tpu.memory_space<vmem>>, vector<1x1x8x8xbf16>
    %218 = vector.shape_cast %217 : vector<1x1x8x8xbf16> to vector<8x8xbf16>
    %219 = vector.shape_cast %215 : vector<8x8xbf16> to vector<1x1x8x8xbf16>
    tpu.vector_store %arg23[%c0_133, %216, %c0_134, %c0_135], %219 {strides = array<i32>} : memref<2x4x8x8xbf16, #tpu.memory_space<vmem>>, vector<1x1x8x8xbf16>,
    %c4_i32 = arith.constant 4 : i32
    %c1_136 = arith.constant 1 : index
    %c0_137 = arith.constant 0 : index
    %c0_138 = arith.constant 0 : index
    %220 = vector.load %arg19[%c1_136, %c0_137, %c0_138] : memref<2x1x8xf32, #tpu.memory_space<vmem>>, vector<1x1x8xf32>
    %221 = vector.shape_cast %220 : vector<1x1x8xf32> to vector<1x8xf32>
    %c0_i32_139 = arith.constant 0 : i32
    %c1_140 = arith.constant 1 : index
    %222 = arith.index_cast %c0_i32_139 : i32 to index
    %c0_141 = arith.constant 0 : index
    %c0_142 = arith.constant 0 : index
    %223 = vector.load %arg20[%c1_140, %222, %c0_141, %c0_142] : memref<2x4x8x8xbf16, #tpu.memory_space<vmem>>, vector<1x1x8x8xbf16>
    %224 = vector.shape_cast %223 : vector<1x1x8x8xbf16> to vector<8x8xbf16>
    %c1_143 = arith.constant 1 : index
    %225 = arith.index_cast %c0_i32_139 : i32 to index
    %c0_144 = arith.constant 0 : index
    %c0_145 = arith.constant 0 : index
    %226 = vector.load %arg21[%c1_143, %225, %c0_144, %c0_145] : memref<2x4x8x8xbf16, #tpu.memory_space<vmem>>, vector<1x1x8x8xbf16>
    %227 = vector.shape_cast %226 : vector<1x1x8x8xbf16> to vector<8x8xbf16>
    %c1_146 = arith.constant 1 : index
    %228 = arith.index_cast %c0_i32_139 : i32 to index
    %c0_147 = arith.constant 0 : index
    %c0_148 = arith.constant 0 : index
    %229 = vector.load %arg22[%c1_146, %228, %c0_147, %c0_148] : memref<2x4x8x8xbf16, #tpu.memory_space<vmem>>, vector<1x1x8x8xbf16>
    %230 = vector.shape_cast %229 : vector<1x1x8x8xbf16> to vector<8x8xbf16>
    %cst_149 = arith.constant dense<0.000000e+00> : vector<8x8xf32>
    %231 = tpu.matmul %224, %227, %cst_149 {dimension_numbers = #tpu.dot_dimension_numbers<[1], [1], [0], [0], [0, 0, 1, 0], [], []>} : vector<8x8xbf16>, vector<8x8xbf16>, vector<8x8xf32> -> vector<8x8xf32>
    %232 = vector.broadcast %221 : vector<1x8xf32> to vector<8x8xf32>
    %233 = arith.addf %231, %232 : vector<8x8xf32>
    %cst_150 = arith.constant dense<0xFF800000> : vector<8xf32>
    %234 = vector.multi_reduction <maximumf>, %233, %cst_150 [1] : vector<8x8xf32> to vector<8xf32>
    %235 = vector.shape_cast %234 : vector<8xf32> to vector<8x1xf32>
    %236 = vector.broadcast %235 : vector<8x1xf32> to vector<8x8xf32>
    %237 = arith.subf %233, %236 : vector<8x8xf32>
    %238 = math.exp %237 : vector<8x8xf32>
    %cst_151 = arith.constant dense<0.000000e+00> : vector<8xf32>
    %239 = vector.multi_reduction <add>, %238, %cst_151 [1] : vector<8x8xf32> to vector<8xf32>
    %240 = vector.shape_cast %239 : vector<8xf32> to vector<8x1xf32>
    %241 = tpu.reciprocal %240 {approx = true} : vector<8x1xf32> -> vector<8x1xf32>
    %242 = arith.truncf %238 : vector<8x8xf32> to vector<8x8xbf16>
    %cst_152 = arith.constant dense<0.000000e+00> : vector<8x8xf32>
    %243 = tpu.matmul %242, %230, %cst_152 {dimension_numbers = #tpu.dot_dimension_numbers<[1], [0], [0], [1], [0, 0, 1, 1], [], []>} : vector<8x8xbf16>, vector<8x8xbf16>, vector<8x8xf32> -> vector<8x8xf32>
    %244 = vector.broadcast %241 : vector<8x1xf32> to vector<8x8xf32>
    %245 = arith.mulf %243, %244 : vector<8x8xf32>
    %246 = arith.truncf %245 : vector<8x8xf32> to vector<8x8xbf16>
    %c1_153 = arith.constant 1 : index
    %247 = arith.index_cast %c0_i32_139 : i32 to index
    %c0_154 = arith.constant 0 : index
    %c0_155 = arith.constant 0 : index
    %248 = vector.load %arg23[%c1_153, %247, %c0_154, %c0_155] : memref<2x4x8x8xbf16, #tpu.memory_space<vmem>>, vector<1x1x8x8xbf16>
    %249 = vector.shape_cast %248 : vector<1x1x8x8xbf16> to vector<8x8xbf16>
    %250 = vector.shape_cast %246 : vector<8x8xbf16> to vector<1x1x8x8xbf16>
    tpu.vector_store %arg23[%c1_153, %247, %c0_154, %c0_155], %250 {strides = array<i32>} : memref<2x4x8x8xbf16, #tpu.memory_space<vmem>>, vector<1x1x8x8xbf16>,
    %c1_i32_156 = arith.constant 1 : i32
    %c1_157 = arith.constant 1 : index
    %251 = arith.index_cast %c1_i32_156 : i32 to index
    %c0_158 = arith.constant 0 : index
    %c0_159 = arith.constant 0 : index
    %252 = vector.load %arg20[%c1_157, %251, %c0_158, %c0_159] : memref<2x4x8x8xbf16, #tpu.memory_space<vmem>>, vector<1x1x8x8xbf16>
    %253 = vector.shape_cast %252 : vector<1x1x8x8xbf16> to vector<8x8xbf16>
    %c1_160 = arith.constant 1 : index
    %254 = arith.index_cast %c1_i32_156 : i32 to index
    %c0_161 = arith.constant 0 : index
    %c0_162 = arith.constant 0 : index
    %255 = vector.load %arg21[%c1_160, %254, %c0_161, %c0_162] : memref<2x4x8x8xbf16, #tpu.memory_space<vmem>>, vector<1x1x8x8xbf16>
    %256 = vector.shape_cast %255 : vector<1x1x8x8xbf16> to vector<8x8xbf16>
    %c1_163 = arith.constant 1 : index
    %257 = arith.index_cast %c1_i32_156 : i32 to index
    %c0_164 = arith.constant 0 : index
    %c0_165 = arith.constant 0 : index
    %258 = vector.load %arg22[%c1_163, %257, %c0_164, %c0_165] : memref<2x4x8x8xbf16, #tpu.memory_space<vmem>>, vector<1x1x8x8xbf16>
    %259 = vector.shape_cast %258 : vector<1x1x8x8xbf16> to vector<8x8xbf16>
    %cst_166 = arith.constant dense<0.000000e+00> : vector<8x8xf32>
    %260 = tpu.matmul %253, %256, %cst_166 {dimension_numbers = #tpu.dot_dimension_numbers<[1], [1], [0], [0], [0, 0, 1, 0], [], []>} : vector<8x8xbf16>, vector<8x8xbf16>, vector<8x8xf32> -> vector<8x8xf32>
    %261 = vector.broadcast %221 : vector<1x8xf32> to vector<8x8xf32>
    %262 = arith.addf %260, %261 : vector<8x8xf32>
    %cst_167 = arith.constant dense<0xFF800000> : vector<8xf32>
    %263 = vector.multi_reduction <maximumf>, %262, %cst_167 [1] : vector<8x8xf32> to vector<8xf32>
    %264 = vector.shape_cast %263 : vector<8xf32> to vector<8x1xf32>
    %265 = vector.broadcast %264 : vector<8x1xf32> to vector<8x8xf32>
    %266 = arith.subf %262, %265 : vector<8x8xf32>
    %267 = math.exp %266 : vector<8x8xf32>
    %cst_168 = arith.constant dense<0.000000e+00> : vector<8xf32>
    %268 = vector.multi_reduction <add>, %267, %cst_168 [1] : vector<8x8xf32> to vector<8xf32>
    %269 = vector.shape_cast %268 : vector<8xf32> to vector<8x1xf32>
    %270 = tpu.reciprocal %269 {approx = true} : vector<8x1xf32> -> vector<8x1xf32>
    %271 = arith.truncf %267 : vector<8x8xf32> to vector<8x8xbf16>
    %cst_169 = arith.constant dense<0.000000e+00> : vector<8x8xf32>
    %272 = tpu.matmul %271, %259, %cst_169 {dimension_numbers = #tpu.dot_dimension_numbers<[1], [0], [0], [1], [0, 0, 1, 1], [], []>} : vector<8x8xbf16>, vector<8x8xbf16>, vector<8x8xf32> -> vector<8x8xf32>
    %273 = vector.broadcast %270 : vector<8x1xf32> to vector<8x8xf32>
    %274 = arith.mulf %272, %273 : vector<8x8xf32>
    %275 = arith.truncf %274 : vector<8x8xf32> to vector<8x8xbf16>
    %c1_170 = arith.constant 1 : index
    %276 = arith.index_cast %c1_i32_156 : i32 to index
    %c0_171 = arith.constant 0 : index
    %c0_172 = arith.constant 0 : index
    %277 = vector.load %arg23[%c1_170, %276, %c0_171, %c0_172] : memref<2x4x8x8xbf16, #tpu.memory_space<vmem>>, vector<1x1x8x8xbf16>
    %278 = vector.shape_cast %277 : vector<1x1x8x8xbf16> to vector<8x8xbf16>
    %279 = vector.shape_cast %275 : vector<8x8xbf16> to vector<1x1x8x8xbf16>
    tpu.vector_store %arg23[%c1_170, %276, %c0_171, %c0_172], %279 {strides = array<i32>} : memref<2x4x8x8xbf16, #tpu.memory_space<vmem>>, vector<1x1x8x8xbf16>,
    %c2_i32_173 = arith.constant 2 : i32
    %c1_174 = arith.constant 1 : index
    %280 = arith.index_cast %c2_i32_173 : i32 to index
    %c0_175 = arith.constant 0 : index
    %c0_176 = arith.constant 0 : index
    %281 = vector.load %arg20[%c1_174, %280, %c0_175, %c0_176] : memref<2x4x8x8xbf16, #tpu.memory_space<vmem>>, vector<1x1x8x8xbf16>
    %282 = vector.shape_cast %281 : vector<1x1x8x8xbf16> to vector<8x8xbf16>
    %c1_177 = arith.constant 1 : index
    %283 = arith.index_cast %c2_i32_173 : i32 to index
    %c0_178 = arith.constant 0 : index
    %c0_179 = arith.constant 0 : index
    %284 = vector.load %arg21[%c1_177, %283, %c0_178, %c0_179] : memref<2x4x8x8xbf16, #tpu.memory_space<vmem>>, vector<1x1x8x8xbf16>
    %285 = vector.shape_cast %284 : vector<1x1x8x8xbf16> to vector<8x8xbf16>
    %c1_180 = arith.constant 1 : index
    %286 = arith.index_cast %c2_i32_173 : i32 to index
    %c0_181 = arith.constant 0 : index
    %c0_182 = arith.constant 0 : index
    %287 = vector.load %arg22[%c1_180, %286, %c0_181, %c0_182] : memref<2x4x8x8xbf16, #tpu.memory_space<vmem>>, vector<1x1x8x8xbf16>
    %288 = vector.shape_cast %287 : vector<1x1x8x8xbf16> to vector<8x8xbf16>
    %cst_183 = arith.constant dense<0.000000e+00> : vector<8x8xf32>
    %289 = tpu.matmul %282, %285, %cst_183 {dimension_numbers = #tpu.dot_dimension_numbers<[1], [1], [0], [0], [0, 0, 1, 0], [], []>} : vector<8x8xbf16>, vector<8x8xbf16>, vector<8x8xf32> -> vector<8x8xf32>
    %290 = vector.broadcast %221 : vector<1x8xf32> to vector<8x8xf32>
    %291 = arith.addf %289, %290 : vector<8x8xf32>
    %cst_184 = arith.constant dense<0xFF800000> : vector<8xf32>
    %292 = vector.multi_reduction <maximumf>, %291, %cst_184 [1] : vector<8x8xf32> to vector<8xf32>
    %293 = vector.shape_cast %292 : vector<8xf32> to vector<8x1xf32>
    %294 = vector.broadcast %293 : vector<8x1xf32> to vector<8x8xf32>
    %295 = arith.subf %291, %294 : vector<8x8xf32>
    %296 = math.exp %295 : vector<8x8xf32>
    %cst_185 = arith.constant dense<0.000000e+00> : vector<8xf32>
    %297 = vector.multi_reduction <add>, %296, %cst_185 [1] : vector<8x8xf32> to vector<8xf32>
    %298 = vector.shape_cast %297 : vector<8xf32> to vector<8x1xf32>
    %299 = tpu.reciprocal %298 {approx = true} : vector<8x1xf32> -> vector<8x1xf32>
    %300 = arith.truncf %296 : vector<8x8xf32> to vector<8x8xbf16>
    %cst_186 = arith.constant dense<0.000000e+00> : vector<8x8xf32>
    %301 = tpu.matmul %300, %288, %cst_186 {dimension_numbers = #tpu.dot_dimension_numbers<[1], [0], [0], [1], [0, 0, 1, 1], [], []>} : vector<8x8xbf16>, vector<8x8xbf16>, vector<8x8xf32> -> vector<8x8xf32>
    %302 = vector.broadcast %299 : vector<8x1xf32> to vector<8x8xf32>
    %303 = arith.mulf %301, %302 : vector<8x8xf32>
    %304 = arith.truncf %303 : vector<8x8xf32> to vector<8x8xbf16>
    %c1_187 = arith.constant 1 : index
    %305 = arith.index_cast %c2_i32_173 : i32 to index
    %c0_188 = arith.constant 0 : index
    %c0_189 = arith.constant 0 : index
    %306 = vector.load %arg23[%c1_187, %305, %c0_188, %c0_189] : memref<2x4x8x8xbf16, #tpu.memory_space<vmem>>, vector<1x1x8x8xbf16>
    %307 = vector.shape_cast %306 : vector<1x1x8x8xbf16> to vector<8x8xbf16>
    %308 = vector.shape_cast %304 : vector<8x8xbf16> to vector<1x1x8x8xbf16>
    tpu.vector_store %arg23[%c1_187, %305, %c0_188, %c0_189], %308 {strides = array<i32>} : memref<2x4x8x8xbf16, #tpu.memory_space<vmem>>, vector<1x1x8x8xbf16>,
    %c3_i32_190 = arith.constant 3 : i32
    %c1_191 = arith.constant 1 : index
    %309 = arith.index_cast %c3_i32_190 : i32 to index
    %c0_192 = arith.constant 0 : index
    %c0_193 = arith.constant 0 : index
    %310 = vector.load %arg20[%c1_191, %309, %c0_192, %c0_193] : memref<2x4x8x8xbf16, #tpu.memory_space<vmem>>, vector<1x1x8x8xbf16>
    %311 = vector.shape_cast %310 : vector<1x1x8x8xbf16> to vector<8x8xbf16>
    %c1_194 = arith.constant 1 : index
    %312 = arith.index_cast %c3_i32_190 : i32 to index
    %c0_195 = arith.constant 0 : index
    %c0_196 = arith.constant 0 : index
    %313 = vector.load %arg21[%c1_194, %312, %c0_195, %c0_196] : memref<2x4x8x8xbf16, #tpu.memory_space<vmem>>, vector<1x1x8x8xbf16>
    %314 = vector.shape_cast %313 : vector<1x1x8x8xbf16> to vector<8x8xbf16>
    %c1_197 = arith.constant 1 : index
    %315 = arith.index_cast %c3_i32_190 : i32 to index
    %c0_198 = arith.constant 0 : index
    %c0_199 = arith.constant 0 : index
    %316 = vector.load %arg22[%c1_197, %315, %c0_198, %c0_199] : memref<2x4x8x8xbf16, #tpu.memory_space<vmem>>, vector<1x1x8x8xbf16>
    %317 = vector.shape_cast %316 : vector<1x1x8x8xbf16> to vector<8x8xbf16>
    %cst_200 = arith.constant dense<0.000000e+00> : vector<8x8xf32>
    %318 = tpu.matmul %311, %314, %cst_200 {dimension_numbers = #tpu.dot_dimension_numbers<[1], [1], [0], [0], [0, 0, 1, 0], [], []>} : vector<8x8xbf16>, vector<8x8xbf16>, vector<8x8xf32> -> vector<8x8xf32>
    %319 = vector.broadcast %221 : vector<1x8xf32> to vector<8x8xf32>
    %320 = arith.addf %318, %319 : vector<8x8xf32>
    %cst_201 = arith.constant dense<0xFF800000> : vector<8xf32>
    %321 = vector.multi_reduction <maximumf>, %320, %cst_201 [1] : vector<8x8xf32> to vector<8xf32>
    %322 = vector.shape_cast %321 : vector<8xf32> to vector<8x1xf32>
    %323 = vector.broadcast %322 : vector<8x1xf32> to vector<8x8xf32>
    %324 = arith.subf %320, %323 : vector<8x8xf32>
    %325 = math.exp %324 : vector<8x8xf32>
    %cst_202 = arith.constant dense<0.000000e+00> : vector<8xf32>
    %326 = vector.multi_reduction <add>, %325, %cst_202 [1] : vector<8x8xf32> to vector<8xf32>
    %327 = vector.shape_cast %326 : vector<8xf32> to vector<8x1xf32>
    %328 = tpu.reciprocal %327 {approx = true} : vector<8x1xf32> -> vector<8x1xf32>
    %329 = arith.truncf %325 : vector<8x8xf32> to vector<8x8xbf16>
    %cst_203 = arith.constant dense<0.000000e+00> : vector<8x8xf32>
    %330 = tpu.matmul %329, %317, %cst_203 {dimension_numbers = #tpu.dot_dimension_numbers<[1], [0], [0], [1], [0, 0, 1, 1], [], []>} : vector<8x8xbf16>, vector<8x8xbf16>, vector<8x8xf32> -> vector<8x8xf32>
    %331 = vector.broadcast %328 : vector<8x1xf32> to vector<8x8xf32>
    %332 = arith.mulf %330, %331 : vector<8x8xf32>
    %333 = arith.truncf %332 : vector<8x8xf32> to vector<8x8xbf16>
    %c1_204 = arith.constant 1 : index
    %334 = arith.index_cast %c3_i32_190 : i32 to index
    %c0_205 = arith.constant 0 : index
    %c0_206 = arith.constant 0 : index
    %335 = vector.load %arg23[%c1_204, %334, %c0_205, %c0_206] : memref<2x4x8x8xbf16, #tpu.memory_space<vmem>>, vector<1x1x8x8xbf16>
    %336 = vector.shape_cast %335 : vector<1x1x8x8xbf16> to vector<8x8xbf16>
    %337 = vector.shape_cast %333 : vector<8x8xbf16> to vector<1x1x8x8xbf16>
    tpu.vector_store %arg23[%c1_204, %334, %c0_205, %c0_206], %337 {strides = array<i32>} : memref<2x4x8x8xbf16, #tpu.memory_space<vmem>>, vector<1x1x8x8xbf16>,
    %c4_i32_207 = arith.constant 4 : i32
    %c0_208 = arith.constant 0 : index
    %c0_209 = arith.constant 0 : index
    %c0_210 = arith.constant 0 : index
    %c0_211 = arith.constant 0 : index
    %338 = vector.load %arg23[%c0_208, %c0_209, %c0_210, %c0_211] : memref<2x4x8x8xbf16, #tpu.memory_space<vmem>>, vector<2x1x8x8xbf16>
    %339 = vector.shape_cast %338 : vector<2x1x8x8xbf16> to vector<2x8x8xbf16>
    %340 = vector.shape_cast %339 : vector<2x8x8xbf16> to vector<16x8xbf16>
    %c0_212 = arith.constant 0 : index
    %c0_213 = arith.constant 0 : index
    %c0_214 = arith.constant 0 : index
    %341 = vector.load %arg9[%c0_212, %c0_213, %c0_214] : memref<1x32x32xbf16, #tpu.memory_space<vmem>>, vector<1x8x32xbf16>
    %342 = vector.shape_cast %341 : vector<1x8x32xbf16> to vector<8x32xbf16>
    %cst_215 = arith.constant dense<0.000000e+00> : vector<16x32xf32>
    %343 = tpu.matmul %340, %342, %cst_215 {dimension_numbers = #tpu.dot_dimension_numbers<[1], [0], [0], [1], [0, 0, 1, 1], [], []>} : vector<16x8xbf16>, vector<8x32xbf16>, vector<16x32xf32> -> vector<16x32xf32>
    %c0_216 = arith.constant 0 : index
    %c1_217 = arith.constant 1 : index
    %c0_218 = arith.constant 0 : index
    %c0_219 = arith.constant 0 : index
    %344 = vector.load %arg23[%c0_216, %c1_217, %c0_218, %c0_219] : memref<2x4x8x8xbf16, #tpu.memory_space<vmem>>, vector<2x1x8x8xbf16>
    %345 = vector.shape_cast %344 : vector<2x1x8x8xbf16> to vector<2x8x8xbf16>
    %346 = vector.shape_cast %345 : vector<2x8x8xbf16> to vector<16x8xbf16>
    %c0_220 = arith.constant 0 : index
    %c8 = arith.constant 8 : index
    %c0_221 = arith.constant 0 : index
    %347 = vector.load %arg9[%c0_220, %c8, %c0_221] : memref<1x32x32xbf16, #tpu.memory_space<vmem>>, vector<1x8x32xbf16>
    %348 = vector.shape_cast %347 : vector<1x8x32xbf16> to vector<8x32xbf16>
    %cst_222 = arith.constant dense<0.000000e+00> : vector<16x32xf32>
    %349 = tpu.matmul %346, %348, %cst_222 {dimension_numbers = #tpu.dot_dimension_numbers<[1], [0], [0], [1], [0, 0, 1, 1], [], []>} : vector<16x8xbf16>, vector<8x32xbf16>, vector<16x32xf32> -> vector<16x32xf32>
    %350 = arith.addf %343, %349 : vector<16x32xf32>
    %c0_223 = arith.constant 0 : index
    %c2_224 = arith.constant 2 : index
    %c0_225 = arith.constant 0 : index
    %c0_226 = arith.constant 0 : index
    %351 = vector.load %arg23[%c0_223, %c2_224, %c0_225, %c0_226] : memref<2x4x8x8xbf16, #tpu.memory_space<vmem>>, vector<2x1x8x8xbf16>
    %352 = vector.shape_cast %351 : vector<2x1x8x8xbf16> to vector<2x8x8xbf16>
    %353 = vector.shape_cast %352 : vector<2x8x8xbf16> to vector<16x8xbf16>
    %c0_227 = arith.constant 0 : index
    %c16 = arith.constant 16 : index
    %c0_228 = arith.constant 0 : index
    %354 = vector.load %arg9[%c0_227, %c16, %c0_228] : memref<1x32x32xbf16, #tpu.memory_space<vmem>>, vector<1x8x32xbf16>
    %355 = vector.shape_cast %354 : vector<1x8x32xbf16> to vector<8x32xbf16>
    %cst_229 = arith.constant dense<0.000000e+00> : vector<16x32xf32>
    %356 = tpu.matmul %353, %355, %cst_229 {dimension_numbers = #tpu.dot_dimension_numbers<[1], [0], [0], [1], [0, 0, 1, 1], [], []>} : vector<16x8xbf16>, vector<8x32xbf16>, vector<16x32xf32> -> vector<16x32xf32>
    %357 = arith.addf %350, %356 : vector<16x32xf32>
    %c0_230 = arith.constant 0 : index
    %c3_231 = arith.constant 3 : index
    %c0_232 = arith.constant 0 : index
    %c0_233 = arith.constant 0 : index
    %358 = vector.load %arg23[%c0_230, %c3_231, %c0_232, %c0_233] : memref<2x4x8x8xbf16, #tpu.memory_space<vmem>>, vector<2x1x8x8xbf16>
    %359 = vector.shape_cast %358 : vector<2x1x8x8xbf16> to vector<2x8x8xbf16>
    %360 = vector.shape_cast %359 : vector<2x8x8xbf16> to vector<16x8xbf16>
    %c0_234 = arith.constant 0 : index
    %c24 = arith.constant 24 : index
    %c0_235 = arith.constant 0 : index
    %361 = vector.load %arg9[%c0_234, %c24, %c0_235] : memref<1x32x32xbf16, #tpu.memory_space<vmem>>, vector<1x8x32xbf16>
    %362 = vector.shape_cast %361 : vector<1x8x32xbf16> to vector<8x32xbf16>
    %cst_236 = arith.constant dense<0.000000e+00> : vector<16x32xf32>
    %363 = tpu.matmul %360, %362, %cst_236 {dimension_numbers = #tpu.dot_dimension_numbers<[1], [0], [0], [1], [0, 0, 1, 1], [], []>} : vector<16x8xbf16>, vector<8x32xbf16>, vector<16x32xf32> -> vector<16x32xf32>
    %364 = arith.addf %357, %363 : vector<16x32xf32>
    %365 = arith.addf %8, %364 : vector<16x32xf32>
    %c0_237 = arith.constant 0 : index
    %c0_238 = arith.constant 0 : index
    %c0_239 = arith.constant 0 : index
    %366 = vector.load %arg10[%c0_237, %c0_238, %c0_239] : memref<1x1x32xf32, #tpu.memory_space<vmem>>, vector<1x1x32xf32>
    %367 = vector.shape_cast %366 : vector<1x1x32xf32> to vector<1x32xf32>
    %368 = vector.broadcast %367 : vector<1x32xf32> to vector<16x32xf32>
    %369 = arith.addf %365, %368 : vector<16x32xf32>
    %c0_240 = arith.constant 0 : index
    %c0_241 = arith.constant 0 : index
    %c0_242 = arith.constant 0 : index
    %370 = vector.load %arg11[%c0_240, %c0_241, %c0_242] : memref<1x1x32xf32, #tpu.memory_space<vmem>>, vector<1x1x32xf32>
    %371 = vector.shape_cast %370 : vector<1x1x32xf32> to vector<1x32xf32>
    %c0_243 = arith.constant 0 : index
    %c0_244 = arith.constant 0 : index
    %c0_245 = arith.constant 0 : index
    %372 = vector.load %arg12[%c0_243, %c0_244, %c0_245] : memref<1x1x32xf32, #tpu.memory_space<vmem>>, vector<1x1x32xf32>
    %373 = vector.shape_cast %372 : vector<1x1x32xf32> to vector<1x32xf32>
    %cst_246 = arith.constant dense<0.000000e+00> : vector<16xf32>
    %374 = vector.multi_reduction <add>, %369, %cst_246 [1] : vector<16x32xf32> to vector<16xf32>
    %375 = vector.shape_cast %374 : vector<16xf32> to vector<16x1xf32>
    %cst_247 = arith.constant 3.200000e+01 : f32
    %376 = vector.broadcast %cst_247 : f32 to vector<16x1xf32>
    %377 = arith.divf %375, %376 : vector<16x1xf32>
    %378 = vector.broadcast %377 : vector<16x1xf32> to vector<16x32xf32>
    %379 = arith.subf %369, %378 : vector<16x32xf32>
    %380 = arith.mulf %379, %379 : vector<16x32xf32>
    %cst_248 = arith.constant dense<0.000000e+00> : vector<16xf32>
    %381 = vector.multi_reduction <add>, %380, %cst_248 [1] : vector<16x32xf32> to vector<16xf32>
    %382 = vector.shape_cast %381 : vector<16xf32> to vector<16x1xf32>
    %cst_249 = arith.constant 3.200000e+01 : f32
    %383 = vector.broadcast %cst_249 : f32 to vector<16x1xf32>
    %384 = arith.divf %382, %383 : vector<16x1xf32>
    %385 = vector.broadcast %377 : vector<16x1xf32> to vector<16x32xf32>
    %386 = arith.subf %369, %385 : vector<16x32xf32>
    %cst_250 = arith.constant 9.99999974E-6 : f32
    %387 = vector.broadcast %cst_250 : f32 to vector<16x1xf32>
    %388 = arith.addf %384, %387 : vector<16x1xf32>
    %389 = math.rsqrt %388 : vector<16x1xf32>
    %390 = vector.broadcast %389 : vector<16x1xf32> to vector<16x32xf32>
    %391 = arith.mulf %386, %390 : vector<16x32xf32>
    %392 = vector.broadcast %371 : vector<1x32xf32> to vector<16x32xf32>
    %393 = arith.mulf %391, %392 : vector<16x32xf32>
    %394 = vector.broadcast %373 : vector<1x32xf32> to vector<16x32xf32>
    %395 = arith.addf %393, %394 : vector<16x32xf32>
    %396 = arith.truncf %395 : vector<16x32xf32> to vector<16x32xbf16>
    %c0_251 = arith.constant 0 : index
    %c0_252 = arith.constant 0 : index
    %c0_253 = arith.constant 0 : index
    %397 = vector.load %arg13[%c0_251, %c0_252, %c0_253] : memref<1x32x128xbf16, #tpu.memory_space<vmem>>, vector<1x32x128xbf16>
    %398 = vector.shape_cast %397 : vector<1x32x128xbf16> to vector<32x128xbf16>
    %c0_254 = arith.constant 0 : index
    %c0_255 = arith.constant 0 : index
    %c0_256 = arith.constant 0 : index
    %399 = vector.load %arg14[%c0_254, %c0_255, %c0_256] : memref<1x1x128xf32, #tpu.memory_space<vmem>>, vector<1x1x128xf32>
    %400 = vector.shape_cast %399 : vector<1x1x128xf32> to vector<1x128xf32>
    %cst_257 = arith.constant dense<0.000000e+00> : vector<16x128xf32>
    %401 = tpu.matmul %396, %398, %cst_257 {dimension_numbers = #tpu.dot_dimension_numbers<[1], [0], [0], [1], [0, 0, 1, 1], [], []>} : vector<16x32xbf16>, vector<32x128xbf16>, vector<16x128xf32> -> vector<16x128xf32>
    %402 = vector.broadcast %400 : vector<1x128xf32> to vector<16x128xf32>
    %403 = arith.addf %401, %402 : vector<16x128xf32>
    %404 = arith.mulf %403, %403 : vector<16x128xf32>
    %405 = arith.mulf %403, %404 : vector<16x128xf32>
    %cst_258 = arith.constant 4.471500e-02 : f32
    %406 = vector.broadcast %cst_258 : f32 to vector<16x128xf32>
    %407 = arith.mulf %406, %405 : vector<16x128xf32>
    %408 = arith.addf %403, %407 : vector<16x128xf32>
    %cst_259 = arith.constant 0.797884583 : f32
    %409 = vector.broadcast %cst_259 : f32 to vector<16x128xf32>
    %410 = arith.mulf %409, %408 : vector<16x128xf32>
    %411 = math.tanh %410 : vector<16x128xf32>
    %cst_260 = arith.constant 1.000000e+00 : f32
    %412 = vector.broadcast %cst_260 : f32 to vector<16x128xf32>
    %413 = arith.addf %412, %411 : vector<16x128xf32>
    %cst_261 = arith.constant 5.000000e-01 : f32
    %414 = vector.broadcast %cst_261 : f32 to vector<16x128xf32>
    %415 = arith.mulf %414, %413 : vector<16x128xf32>
    %416 = arith.mulf %403, %415 : vector<16x128xf32>
    %c0_262 = arith.constant 0 : index
    %c0_263 = arith.constant 0 : index
    %c0_264 = arith.constant 0 : index
    %417 = vector.load %arg15[%c0_262, %c0_263, %c0_264] : memref<1x128x32xbf16, #tpu.memory_space<vmem>>, vector<1x128x32xbf16>
    %418 = vector.shape_cast %417 : vector<1x128x32xbf16> to vector<128x32xbf16>
    %419 = arith.truncf %416 : vector<16x128xf32> to vector<16x128xbf16>
    %cst_265 = arith.constant dense<0.000000e+00> : vector<16x32xf32>
    %420 = tpu.matmul %419, %418, %cst_265 {dimension_numbers = #tpu.dot_dimension_numbers<[1], [0], [0], [1], [0, 0, 1, 1], [], []>} : vector<16x128xbf16>, vector<128x32xbf16>, vector<16x32xf32> -> vector<16x32xf32>
    %421 = arith.addf %369, %420 : vector<16x32xf32>
    %c0_266 = arith.constant 0 : index
    %c0_267 = arith.constant 0 : index
    %c0_268 = arith.constant 0 : index
    %422 = vector.load %arg16[%c0_266, %c0_267, %c0_268] : memref<1x1x32xf32, #tpu.memory_space<vmem>>, vector<1x1x32xf32>
    %423 = vector.shape_cast %422 : vector<1x1x32xf32> to vector<1x32xf32>
    %424 = vector.broadcast %423 : vector<1x32xf32> to vector<16x32xf32>
    %425 = arith.addf %421, %424 : vector<16x32xf32>
    %c0_269 = arith.constant 0 : index
    %c0_270 = arith.constant 0 : index
    %426 = vector.load %arg18[%c0_269, %c0_270] : memref<16x32xf32, #tpu.memory_space<vmem>>, vector<16x32xf32>
    tpu.vector_store %arg18[%c0_269, %c0_270], %425 {strides = array<i32>} : memref<16x32xf32, #tpu.memory_space<vmem>>, vector<16x32xf32>,
    %c1_i32_271 = arith.constant 1 : i32
    %427 = arith.cmpi eq, %arg1, %c1_i32_271 : i32
    %428 = arith.extui %427 : i1 to i32
    %c0_i32_272 = arith.constant 0 : i32
    %429 = arith.cmpi ne, %428, %c0_i32_272 : i32
    scf.if %429 {
      %430 = vector.shape_cast %425 : vector<16x32xf32> to vector<2x8x32xf32>
      %c0_273 = arith.constant 0 : index
      %c0_274 = arith.constant 0 : index
      %c0_275 = arith.constant 0 : index
      %431 = vector.load %arg17[%c0_273, %c0_274, %c0_275] : memref<2x8x32xf32, #tpu.memory_space<vmem>>, vector<2x8x32xf32>
      tpu.vector_store %arg17[%c0_273, %c0_274, %c0_275], %430 {strides = array<i32>} : memref<2x8x32xf32, #tpu.memory_space<vmem>>, vector<2x8x32xf32>,
    } else {
    }
    return
  }
  func.func @transform_0(%arg0: i32, %arg1: i32) -> (i32, i32, i32) {
    %c0_i32 = arith.constant 0 : i32
    %c0_i32_0 = arith.constant 0 : i32
    %c0_i32_1 = arith.constant 0 : i32
    return %arg0, %c0_i32, %c0_i32_0 : i32, i32, i32
  }
  func.func @transform_1(%arg0: i32, %arg1: i32) -> (i32, i32, i32) {
    %c0_i32 = arith.constant 0 : i32
    %c0_i32_0 = arith.constant 0 : i32
    %c0_i32_1 = arith.constant 0 : i32
    %c0_i32_2 = arith.constant 0 : i32
    return %c0_i32, %c0_i32_0, %c0_i32_1 : i32, i32, i32
  }
  func.func @transform_2(%arg0: i32, %arg1: i32) -> (i32, i32, i32) {
    %c0_i32 = arith.constant 0 : i32
    %c0_i32_0 = arith.constant 0 : i32
    %c0_i32_1 = arith.constant 0 : i32
    return %arg0, %c0_i32, %c0_i32_0 : i32, i32, i32
  }
  func.func @transform_3(%arg0: i32, %arg1: i32) -> (i32, i32, i32) {
    %c0_i32 = arith.constant 0 : i32
    %c0_i32_0 = arith.constant 0 : i32
    %c0_i32_1 = arith.constant 0 : i32
    return %arg1, %c0_i32, %c0_i32_0 : i32, i32, i32
  }
  func.func @transform_4(%arg0: i32, %arg1: i32) -> (i32, i32, i32) {
    %c0_i32 = arith.constant 0 : i32
    %c0_i32_0 = arith.constant 0 : i32
    %c0_i32_1 = arith.constant 0 : i32
    return %arg1, %c0_i32, %c0_i32_0 : i32, i32, i32
  }
  func.func @transform_5(%arg0: i32, %arg1: i32) -> (i32, i32, i32) {
    %c0_i32 = arith.constant 0 : i32
    %c0_i32_0 = arith.constant 0 : i32
    %c0_i32_1 = arith.constant 0 : i32
    return %arg1, %c0_i32, %c0_i32_0 : i32, i32, i32
  }
  func.func @transform_6(%arg0: i32, %arg1: i32) -> (i32, i32, i32) {
    %c0_i32 = arith.constant 0 : i32
    %c0_i32_0 = arith.constant 0 : i32
    %c0_i32_1 = arith.constant 0 : i32
    return %arg1, %c0_i32, %c0_i32_0 : i32, i32, i32
  }
  func.func @transform_7(%arg0: i32, %arg1: i32) -> (i32, i32, i32) {
    %c0_i32 = arith.constant 0 : i32
    %c0_i32_0 = arith.constant 0 : i32
    %c0_i32_1 = arith.constant 0 : i32
    return %arg1, %c0_i32, %c0_i32_0 : i32, i32, i32
  }
  func.func @transform_8(%arg0: i32, %arg1: i32) -> (i32, i32, i32) {
    %c0_i32 = arith.constant 0 : i32
    %c0_i32_0 = arith.constant 0 : i32
    %c0_i32_1 = arith.constant 0 : i32
    return %arg1, %c0_i32, %c0_i32_0 : i32, i32, i32
  }
  func.func @transform_9(%arg0: i32, %arg1: i32) -> (i32, i32, i32) {
    %c0_i32 = arith.constant 0 : i32
    %c0_i32_0 = arith.constant 0 : i32
    %c0_i32_1 = arith.constant 0 : i32
    return %arg1, %c0_i32, %c0_i32_0 : i32, i32, i32
  }
  func.func @transform_10(%arg0: i32, %arg1: i32) -> (i32, i32, i32) {
    %c0_i32 = arith.constant 0 : i32
    %c0_i32_0 = arith.constant 0 : i32
    %c0_i32_1 = arith.constant 0 : i32
    return %arg1, %c0_i32, %c0_i32_0 : i32, i32, i32
  }
  func.func @transform_11(%arg0: i32, %arg1: i32) -> (i32, i32, i32) {
    %c0_i32 = arith.constant 0 : i32
    %c0_i32_0 = arith.constant 0 : i32
    %c0_i32_1 = arith.constant 0 : i32
    return %arg1, %c0_i32, %c0_i32_0 : i32, i32, i32
  }
  func.func @transform_12(%arg0: i32, %arg1: i32) -> (i32, i32, i32) {
    %c0_i32 = arith.constant 0 : i32
    %c0_i32_0 = arith.constant 0 : i32
    %c0_i32_1 = arith.constant 0 : i32
    return %arg1, %c0_i32, %c0_i32_0 : i32, i32, i32
  }
  func.func @transform_13(%arg0: i32, %arg1: i32) -> (i32, i32, i32) {
    %c0_i32 = arith.constant 0 : i32
    %c0_i32_0 = arith.constant 0 : i32
    %c0_i32_1 = arith.constant 0 : i32
    return %arg1, %c0_i32, %c0_i32_0 : i32, i32, i32
  }
  func.func @transform_14(%arg0: i32, %arg1: i32) -> (i32, i32, i32) {
    %c0_i32 = arith.constant 0 : i32
    %c0_i32_0 = arith.constant 0 : i32
    %c0_i32_1 = arith.constant 0 : i32
    return %arg1, %c0_i32, %c0_i32_0 : i32, i32, i32
  }
  func.func @transform_15(%arg0: i32, %arg1: i32) -> (i32, i32, i32) {
    %c0_i32 = arith.constant 0 : i32
    %c0_i32_0 = arith.constant 0 : i32
    %c0_i32_1 = arith.constant 0 : i32
    return %arg0, %c0_i32, %c0_i32_0 : i32, i32, i32
  }
}

</mosaic_0001>

<bundles_post_ra>
// kernel: tpu_custom_call.1
= control target key start
LH: loop header
LB: loop body
LE: loop exit
PB: predicated region body
PF: predicated region fallthrough
CT: control target
= control target key end

     0   :  { %s3560_s0 = inlined_call_operand.vmem [shape: f32[2,8,32], index: 0, kind: input, shape index: {}]   ;;  %s3561_s1 = inlined_call_operand.vmem [shape: f32[1,8,32], index: 1, kind: input, shape index: {}]   ;;  %s3562_s2 = inlined_call_operand.vmem [shape: f32[2,1,8], index: 2, kind: input, shape index: {}]   ;;  %s3563_s3 = inlined_call_operand.vmem [shape: f32[2,1,32], index: 3, kind: input, shape index: {}]   ;;  %s3564_s4 = inlined_call_operand.vmem [shape: f32[2,1,32], index: 4, kind: input, shape index: {}]   ;;  %s3565_s5 = inlined_call_operand.vmem [shape: bf16[2,32,96], index: 5, kind: input, shape index: {}]   ;;  %s3566_s6 = inlined_call_operand.vmem [shape: f32[2,1,96], index: 6, kind: input, shape index: {}]   ;;  %s3567_s7 = inlined_call_operand.vmem [shape: bf16[2,32,32], index: 7, kind: input, shape index: {}]   ;;  %s3568_s8 = inlined_call_operand.vmem [shape: f32[2,1,32], index: 8, kind: input, shape index: {}]   ;;  %s3569_s9 = inlined_call_operand.vmem [shape: f32[2,1,32], index: 9, kind: input, shape index: {}]   ;;  %s3570_s10 = inlined_call_operand.vmem [shape: f32[2,1,32], index: 10, kind: input, shape index: {}]   ;;  %s3571_s11 = inlined_call_operand.vmem [shape: bf16[2,32,128], index: 11, kind: input, shape index: {}]   ;;  %s3572_s12 = inlined_call_operand.vmem [shape: f32[2,1,128], index: 12, kind: input, shape index: {}]   ;;  %s3573_s13 = inlined_call_operand.vmem [shape: bf16[2,128,32], index: 13, kind: input, shape index: {}]   ;;  %s3574_s14 = inlined_call_operand.vmem [shape: f32[2,1,32], index: 14, kind: input, shape index: {}]   ;;  %s3575_s15 = inlined_call_operand.hbm [shape: f32[2,8,32], index: 15, kind: output, shape index: {}]  }
   0x1   :  { %3579 = sst [smem:[#allocation15_spill]] %s3563_s3 }
   0x2   :  { %3580 = sst [smem:[#allocation16_spill]] %s3564_s4 }
   0x3   :  { %3581 = sst [smem:[#allocation17_spill]] %s3565_s5 }
   0x4   :  { %3582 = sst [smem:[#allocation18_spill]] %s3567_s7 }
   0x5   :  { %3583 = sst [smem:[#allocation19_spill]] %s3575_s15 }
   0x6   :  { %20 = vsyncpa [#allocation9], 0  ;;  %s3108_s18 = smov 0   ;;  %s3110_s19 = smov 0  }
   0x7   :  { %s3112_s20 = smov 0  }
   0x8 LB: > { %3584 = sst [smem:[#allocation11_spill]] %s3005_s19  ;;  %s35_s22 = sadd.s32 1, %s3005_s19  ;;  %s3009_s20 = sphi %s3112_s20, %s26_s20   ;;  %s3005_s19 = sphi %s3110_s19, %s3605_s19   ;;  %s3001_s18 = sphi %s3108_s18, %s3604_s18  }
   0x9   : > { %3585 = sst [smem:[#allocation12_spill]] %s3009_s20  ;;  %p36_p0 = scmp.ge.s32.totalorder %s35_s22, 2 }
   0xa   : > { %p2566_p1 = scmp.ge.s32.totalorder %s3009_s20, 1  ;;  %p565_p2 = scmp.lt.s32.totalorder %s3009_s20, 3 }
   0xb   : > { %s3607_s22 = smov (%p36_p0, %s35_s22), 0 }
   0xc   : > { %3586 = sst [smem:[#allocation13_spill]] %s3607_s22  ;;  %p566_p3 = pnand %p2566_p1, %p565_p2 }
   0xe   : > { %569 = sbr.rel (%p566_p3) target bundleno = 2665 (0xa69), region = 80 }
  0x13   : > { %p667_p4 = scmp.lt.s32.totalorder %s3001_s18, 1  ;;  %s3589_s5 = sld [smem:[#allocation17_spill]] }
  0x14   : > { %s3590_s7 = sld [smem:[#allocation18_spill]]  ;;  %p2575_p5 = scmp.ne.s32.totalorder %s3001_s18, 0 }
  0x15   : > { %s3131_s23 = scalar_select %p667_p4, %s3001_s18, 1 }
  0x17   : > { %s2633_s30 = sshll.u32 %s3131_s23, 4  ;;  %s691_s4 = scalar_lea.vmem %s3569_s9, %s3131_s23 }
  0x18   : > { %s694_s21 = scalar_lea.vmem %s3570_s10, %s3131_s23  ;;  %s710_s16 = scalar_lea.vmem %s3574_s14, %s3131_s23 }
  0x19   : > { %s3149_s22 = scalar_lea.vmem %s3589_s5, %s2633_s30  ;;  %s3171_s5 = scalar_lea.vmem %s3571_s11, %s2633_s30 }
  0x1a   : > { %s3154_s20 = scalar_lea.vmem %s3590_s7, %s2633_s30  ;;  %s702_s7 = scalar_lea.vmem %s3572_s12, %s3131_s23 }
  0x1b   : > { %3591 = sst [smem:[#allocation14_spill]] %s3154_s20  ;;  %s2636_s20 = sshll.u32 %s3131_s23, 6 }
  0x1c   : > { %s3181_s27 = scalar_lea.vmem %s3573_s13, %s2636_s20  ;;  %716 = sbr.rel (%p2575_p5) target bundleno = 38 (0x26), region = 84 }
  0x21   : > { %v717_v0 = vld [vmem:[%s3560_s0] sm:$0xff]  ;;  %vm719_vm0 = vcmask 261120   ;;  %v718_v1 = vld [vmem:[%s3560_s0 + $0x8] sm:$0xff]  ;;  %vm728_vm2 = vcmask 57344   ;;  %v3011_v4 = vmov 0.0  }
  0x22   : > { %v722_v2 = vld [vmem:[%s3562_s2] sm:$0x1]  ;;  %720 = vst.msk [vmem:[#allocation2] sm:$0xff] %vm719_vm0, %v717_v0  ;;  %721 = vst.msk [vmem:[#allocation2 + $0x8] sm:$0xff] %vm719_vm0, %v718_v1  ;;  %v723_v3 = vld [vmem:[%s3562_s2 + $0x1] sm:$0x1] }
  0x23   : > { %vm724_vm1 = vcmp.gt.f32.partialorder %v722_v2, 0.5  ;;  %vm725_vm3 = vcmp.gt.f32.partialorder %v723_v3, 0.5 }
  0x24   : > { %v726_v5 = vsel %vm724_vm1, -1e+30, %v3011_v4  ;;  %v727_v6 = vsel %vm725_vm3, -1e+30, %v3011_v4 }
  0x25   : > { %729 = vst.msk [vmem:[#allocation3] sm:$0x1] %vm728_vm2, %v726_v5  ;;  %730 = vst.msk [vmem:[#allocation3 + $0x1] sm:$0x1] %vm728_vm2, %v727_v6 }
  0x26 PF: > { %v731_v7 = vld [vmem:[%s3561_s1] sm:$0xff]  ;;  %vm738_vm4 = vcmask 261120   ;;  %v2899_v24 = vld [vmem:[%s3149_s22 + $0x8] sm:$0xff]   ;;  %v3012_v25 = vmov 0.0   ;;  %vm3013_vm5 = vmmov 0   ;;  %s3592_s17 = sld [smem:[#allocation15_spill]]  ;;  %s3596_s26 = scalar_lea.vmem %s3566_s6, %s3131_s23 }
  0x27   : > { %2696 = vmatprep.subr.bf16.mxu1 %v3012_v25  ;;  %2700 = vmatprep.mubr.msk.bf16.mxu1 %vm3013_vm5, %v3012_v25  ;;  %v2900_v26 = vld [vmem:[%s3149_s22] sm:$0xff]   ;;  %s3594_s15 = sld [smem:[#allocation16_spill]]  ;;  %vm866_vm6 = vcmask 60416   ;;  %s3014_s29 = smov 64   ;;  %vm976_vm7 = vcmask 64512   ;;  %vm1037_vm8 = vcmask 1043456  }
  0x28   : > { %2697 = vmatpush3.bf16.msra.mxu1 %v2899_v24  ;;  %2722 = vmatprep.subr.bf16.mxu0 %v3012_v25  ;;  %v2578_v44 = vld [vmem:[%s3596_s26] ss:$0 sm:$0xff]  ;;  %s3015_s22 = smov 96   ;;  %s3016_s28 = smov 88  }
  0x29   : > { %v732_v8 = vld [vmem:[#allocation2] sm:$0xff]  ;;  %v733_v9 = vld [vmem:[#allocation2 + $0x8] sm:$0xff]  ;;  %2698 = vmatprep.subr.bf16.mxu1 %v3012_v25  ;;  %2724 = vmatprep.mubr.msk.bf16.mxu0 %vm3013_vm5, %v3012_v25  ;;  %s3019_s24 = smov 80   ;;  %s3020_s25 = smov 72  }
  0x2a   : > { %v3203_v10 = vadd.f32 %v732_v8, %v731_v7  ;;  %v3205_v11 = vadd.f32 %v733_v9, %v731_v7  ;;  %s3023_s20 = smov 48   ;;  %s3024_s3 = smov 40  }
  0x2b   : > { %s3597_s26 = sld [smem:[#allocation14_spill]]  ;;  %p2628_p6 = scmp.ne.s32.totalorder %s3001_s18, 1 }
  0x2c   : > { %v739_v12 = vsel %vm738_vm4, %v3203_v10, 0.0  ;;  %v742_v13 = vsel %vm738_vm4, %v3205_v11, 0.0  ;;  %2699 = vmatpush3.bf16.msra.mxu1 %v2900_v26  ;;  %s3593_s30 = scalar_lea.vmem %s3592_s17, %s3131_s23  ;;  %s3017_s17 = smov 120  }
  0x2d   : > { %740 = vadd.xlane.f32.xlu0 %v739_v12  ;;  %2704 = vmatprep.subr.bf16.mxu1 %v3012_v25  ;;  %v2576_v35 = vld [vmem:[%s3593_s30] ss:$0 sm:$0xff]  ;;  %s3595_s19 = scalar_lea.vmem %s3594_s15, %s3131_s23  ;;  %s3018_s30 = smov 112   ;;  %v3290_v12 = vld [vmem:[#allocation3] ss:$0 sm:$0xff] }
  0x2e   : > { %v2577_v39 = vld [vmem:[%s3595_s19] ss:$0 sm:$0xff]  ;;  %s3021_s15 = smov 56   ;;  %s3022_s19 = smov 104  }
  0x31   : > { %743 = vadd.xlane.f32.xlu0 %v742_v13 }
  0xb6   : > { %v741_v14 = vpop.xlane.xlu0 %740 }
  0xb7   : > { %v746_v15 = vmul.f32 0.03125, %v741_v14 }
  0xb9   : > { %v748_v16 = vsub.f32 %v3203_v10, %v746_v15 }
  0xba   : > { %v744_v17 = vpop.xlane.xlu0 %743 }
  0xbb   : > { %v747_v18 = vmul.f32 0.03125, %v744_v17  ;;  %v750_v19 = vmul.f32 %v748_v16, %v748_v16 }
  0xbd   : > { %v749_v20 = vsub.f32 %v3205_v11, %v747_v18  ;;  %v752_v21 = vsel %vm738_vm4, %v750_v19, 0.0 }
  0xbe   : > { %753 = vadd.xlane.f32.xlu1 %v752_v21 }
  0xbf   : > { %v751_v22 = vmul.f32 %v749_v20, %v749_v20 }
  0xc1   : > { %v755_v23 = vsel %vm738_vm4, %v751_v22, 0.0 }
  0xc2   : > { %756 = vadd.xlane.f32.xlu1 %v755_v23 }
 0x147   : > { %v754_v27 = vpop.xlane.xlu1 %753 }
 0x148   : > { %v758_v28 = vmul.f32 0.03125, %v754_v27 }
 0x14a   : > { %v760_v29 = vadd.f32 1e-05, %v758_v28 }
 0x14b   : > { %v757_v30 = vpop.xlane.xlu1 %756 }
 0x14c   : > { %2915 = vrsqrt.f32 %v760_v29  ;;  %v759_v31 = vmul.f32 0.03125, %v757_v30 }
 0x14e   : > { %v761_v32 = vadd.f32 1e-05, %v759_v31 }
 0x150   : > { %2917 = vrsqrt.f32 %v761_v32 }
 0x159   : > { %v2916_v33 = vpop.eup %2915 }
 0x15a   : > { %v764_v34 = vmul.f32 %v2916_v33, %v748_v16 }
 0x15c   : > { %v772_v38 = vmul.f32 %v2576_v35, %v764_v34 }
 0x15d   : > { %v2918_v36 = vpop.eup %2917 }
 0x15e   : > { %v765_v37 = vmul.f32 %v2918_v36, %v749_v20  ;;  %v780_v41 = vadd.f32 %v2577_v39, %v772_v38 }
 0x160   : > { %v773_v40 = vmul.f32 %v2576_v35, %v765_v37 }
 0x162   : > { %v781_v42 = vadd.f32 %v2577_v39, %v773_v40 }
 0x164   : > { %v782_v43 = vpack.c.bf16 %v781_v42, %v780_v41 }
 0x166   : > { %2701 = vmatmul.mubr.msk.bf16.vlgmr.msra.gmra.mxu1 %vm738_vm4, %v782_v43 }
 0x167   : > { %2706 = vmatprep.mubr.msk.bf16.mxu1 %vm3013_vm5, %v3012_v25 }
 0x226   : > { %v843_v45 = vpop.f32.mrf.mxu1 }
 0x227   : > { %v844_v46 = vadd.f32 %v2578_v44, %v843_v45 }
 0x228   : > { %v2702_v47 = vpop.f32.mrf.mxu1 }
 0x229   : > { %v850_v48 = vmul.f32 0.35355338, %v844_v46  ;;  %v3243_v49 = vpack.c.bf16 %v844_v46, %v844_v46 }
 0x22a   : > { %v846_v50 = vpop.f32.mrf.mxu1 }
 0x22b   : > { %v3245_v51 = vpack.c.bf16 %v850_v48, %v850_v48  ;;  %v847_v52 = vadd.f32 %v2578_v44, %v846_v50  ;;  %877 = vrot.lane.b32.xlu1 %v3243_v49, %s3014_s29  ;;  %869 = vrot.lane.b32.xlu0 %v3243_v49, %s3015_s22 }
 0x22c   : > { %v2703_v53 = vpop.f32.mrf.mxu1 }
 0x22d   : > { %867 = vst.msk [vmem:[#allocation4] sm:$0xf] %vm866_vm6, %v3245_v51  ;;  %v851_v54 = vmul.f32 0.35355338, %v847_v52  ;;  %v3261_v56 = vpack.c.bf16 %v847_v52, %v847_v52 }
 0x22f   : > { %v3252_v55 = vpack.c.bf16 %v851_v54, %v851_v54  ;;  %894 = vrot.lane.b32.xlu1 %v3243_v49, %s3016_s28  ;;  %885 = vrot.lane.b32.xlu0 %v3245_v51, %s3017_s17 }
 0x231   : > { %868 = vst.msk [vmem:[#allocation4 + $0x10] sm:$0xf] %vm866_vm6, %v3252_v55 }
 0x233   : > { %912 = vrot.lane.b32.xlu0 %v3245_v51, %s3018_s30 }
 0x234   : > { %v967_v3 = vld [vmem:[#allocation4] sm:$0xf] }
 0x237   : > { %871 = vrot.lane.b32.xlu0 %v3261_v56, %s3015_s22 }
 0x238   : > { %v1417_v45 = vld [vmem:[#allocation4 + $0x10] sm:$0xf] }
 0x23b   : > { %896 = vrot.lane.b32.xlu0 %v3261_v56, %s3016_s28  ;;  %s3598_s28 = scalar_lea.vmem %s3568_s8, %s3131_s23 }
 0x23f   : > { %923 = vrot.lane.b32.xlu0 %v3261_v56, %s3019_s24 }
 0x243   : > { %950 = vrot.lane.b32.xlu0 %v3261_v56, %s3020_s25 }
 0x247   : > { %903 = vrot.lane.b32.xlu0 %v3243_v49, %s3021_s15 }
 0x29d   : > { %v878_v57 = vpop.permute.xlu1 %877  ;;  %v870_v58 = vpop.permute.xlu0 %869 }
 0x29e   : > { %883 = vst.msk [vmem:[#allocation6] sm:$0xf] %vm866_vm6, %v878_v57  ;;  %875 = vst.msk [vmem:[#allocation5] sm:$0xf] %vm866_vm6, %v870_v58 }
 0x2a1   : > { %v895_v59 = vpop.permute.xlu1 %894  ;;  %v886_v60 = vpop.permute.xlu0 %885 }
 0x2a2   : > { %901 = vst.msk [vmem:[#allocation5 + $0x4] sm:$0xf] %vm866_vm6, %v895_v59  ;;  %892 = vst.msk [vmem:[#allocation4 + $0x4] sm:$0xf] %vm866_vm6, %v886_v60 }
 0x2a5   : > { %v913_v61 = vpop.permute.xlu0 %912  ;;  %v968_v62 = vld [vmem:[#allocation5] sm:$0xf] }
 0x2a6   : > { %919 = vst.msk [vmem:[#allocation4 + $0x8] sm:$0xf] %vm866_vm6, %v913_v61  ;;  %v981_v63 = vsel %vm976_vm7, %v968_v62, 0  ;;  %v969_v1 = vld [vmem:[#allocation6] sm:$0xf] }
 0x2a7   : > { %2705 = vmatpush3.bf16.xpose.msra.mxu1 %v981_v63  ;;  %v1039_v4 = vsel %vm1037_vm8, %v969_v1, 0 }
 0x2a8   : > { %2710 = vmatprep.subr.bf16.mxu1 %v3012_v25 }
 0x2a9   : > { %v872_v0 = vpop.permute.xlu0 %871  ;;  %v1085_v28 = vld [vmem:[#allocation5 + $0x4] sm:$0xf] }
 0x2aa   : > { %876 = vst.msk [vmem:[#allocation5 + $0x10] sm:$0xf] %vm866_vm6, %v872_v0  ;;  %v1091_v31 = vsel %vm976_vm7, %v1085_v28, 0  ;;  %v1084_v35 = vld [vmem:[#allocation4 + $0x4] sm:$0xf] }
 0x2ad   : > { %v897_v2 = vpop.permute.xlu0 %896  ;;  %v1194_v39 = vld [vmem:[#allocation4 + $0x8] sm:$0xf] }
 0x2ae   : > { %902 = vst.msk [vmem:[#allocation5 + $0x14] sm:$0xf] %vm866_vm6, %v897_v2  ;;  %2707 = vmatmul.mubr.msk.bf16.vlgmr.msra.gmra.mxu1 %vm976_vm7, %v967_v3 }
 0x2af   : > { %2711 = vmatpush3.bf16.msra.mxu1 %v1039_v4  ;;  %2712 = vmatprep.mubr.msk.bf16.mxu1 %vm3013_vm5, %v3012_v25 }
 0x2b0   : > { %2716 = vmatprep.subr.bf16.mxu1 %v3012_v25 }
 0x2b1   : > { %v924_v5 = vpop.permute.xlu0 %923  ;;  %v1419_v41 = vld [vmem:[#allocation5 + $0x10] sm:$0xf] }
 0x2b2   : > { %929 = vst.msk [vmem:[#allocation5 + $0x18] sm:$0xf] %vm866_vm6, %v924_v5  ;;  %v1432_v43 = vsel %vm976_vm7, %v1419_v41, 0 }
 0x2b5   : > { %v951_v6 = vpop.permute.xlu0 %950  ;;  %v1538_v44 = vld [vmem:[#allocation5 + $0x14] sm:$0xf] }
 0x2b6   : > { %956 = vst.msk [vmem:[#allocation5 + $0x1c] sm:$0xf] %vm866_vm6, %v951_v6  ;;  %v1545_v46 = vsel %vm976_vm7, %v1538_v44, 0 }
 0x2b9   : > { %v904_v7 = vpop.permute.xlu0 %903  ;;  %v1651_v47 = vld [vmem:[#allocation5 + $0x18] sm:$0xf] }
 0x2ba   : > { %910 = vst.msk [vmem:[#allocation6 + $0x4] sm:$0xf] %vm866_vm6, %v904_v7 }
 0x2bd   : > { %v1764_v50 = vld [vmem:[#allocation5 + $0x1c] sm:$0xf] }
 0x2be   : > { %v1771_v52 = vsel %vm976_vm7, %v1764_v50, 0 }
 0x2c1   : > { %v1086_v8 = vld [vmem:[#allocation6 + $0x4] sm:$0xf] }
 0x2c2   : > { %v1148_v9 = vsel %vm1037_vm8, %v1086_v8, 0 }
 0x2c3   : > { %2723 = vmatpush3.bf16.msra.mxu0 %v1148_v9 }
 0x2c4   : > { %2734 = vmatprep.subr.bf16.mxu0 %v3012_v25 }
 0x36e   : > { %v1017_v13 = vpop.f32.mrf.mxu1 }
 0x36f   : > { %v1018_v14 = vadd.f32 %v3290_v12, %v1017_v13 }
 0x370   : > { %v2708_v15 = vpop.f32.mrf.mxu1 }
 0x371   : > { %v1023_v16 = vsel %vm976_vm7, %v1018_v14, -inf }
 0x372   : > { %1024 = vmax.xlane.f32.xlu1 %v1023_v16  ;;  %v1020_v17 = vpop.f32.mrf.mxu1  ;;  %v2595_v16 = vld [vmem:[#allocation3 + $0x1] ss:$0 sm:$0xff] }
 0x374   : > { %v2709_v18 = vpop.f32.mrf.mxu1 }
 0x383   : > { %921 = vrot.lane.b32.xlu1 %v3243_v49, %s3019_s24 }
 0x387   : > { %948 = vrot.lane.b32.xlu1 %v3243_v49, %s3020_s25 }
 0x38b   : > { %939 = vrot.lane.b32.xlu1 %v3245_v51, %s3022_s19 }
 0x38f   : > { %887 = vrot.lane.b32.xlu1 %v3252_v55, %s3017_s17 }
 0x393   : > { %914 = vrot.lane.b32.xlu1 %v3252_v55, %s3018_s30 }
 0x397   : > { %941 = vrot.lane.b32.xlu1 %v3252_v55, %s3022_s19 }
 0x39b   : > { %930 = vrot.lane.b32.xlu1 %v3243_v49, %s3023_s20 }
 0x39f   : > { %957 = vrot.lane.b32.xlu1 %v3243_v49, %s3024_s3  ;;  %v1658_v49 = vsel %vm976_vm7, %v1651_v47, 0 }
 0x3fb   : > { %v1025_v19 = vpop.xlane.xlu1 %1024 }
 0x3fc   : > { %v1026_v20 = vsub.f32 %v1018_v14, %v1025_v19 }
 0x3fe   : > { %v1027_v21 = vmul.f32 1.442695, %v1026_v20 }
 0x3ff   : > { %v922_v22 = vpop.permute.xlu1 %921 }
 0x400   : > { %2919 = vpow2.f32 %v1027_v21  ;;  %928 = vst.msk [vmem:[#allocation5 + $0x8] sm:$0xf] %vm866_vm6, %v922_v22 }
 0x403   : > { %v949_v23 = vpop.permute.xlu1 %948 }
 0x404   : > { %955 = vst.msk [vmem:[#allocation5 + $0xc] sm:$0xf] %vm866_vm6, %v949_v23 }
 0x407   : > { %v940_v24 = vpop.permute.xlu1 %939  ;;  %v1195_v33 = vld [vmem:[#allocation5 + $0x8] sm:$0xf] }
 0x408   : > { %946 = vst.msk [vmem:[#allocation4 + $0xc] sm:$0xf] %vm866_vm6, %v940_v24  ;;  %v1201_v36 = vsel %vm976_vm7, %v1195_v33, 0 }
 0x40b   : > { %v888_v26 = vpop.permute.xlu1 %887  ;;  %v1305_v38 = vld [vmem:[#allocation5 + $0xc] sm:$0xf] }
 0x40c   : > { %893 = vst.msk [vmem:[#allocation4 + $0x14] sm:$0xf] %vm866_vm6, %v888_v26  ;;  %v1311_v40 = vsel %vm976_vm7, %v1305_v38, 0 }
 0x40d   : > { %v3312_v27 = vpop.eup %2919 }
 0x40e   : > { %v1033_v29 = vpack.c.bf16 %v3312_v27, %v3312_v27 }
 0x40f   : > { %v915_v30 = vpop.permute.xlu1 %914  ;;  %v1304_v42 = vld [vmem:[#allocation4 + $0xc] sm:$0xf] }
 0x410   : > { %920 = vst.msk [vmem:[#allocation4 + $0x18] sm:$0xf] %vm866_vm6, %v915_v30  ;;  %2713 = vmatmul.mubr.msk.bf16.vlgmr.msra.gmra.mxu1 %vm976_vm7, %v1033_v29 }
 0x411   : > { %2717 = vmatpush3.bf16.xpose.msra.mxu1 %v1091_v31  ;;  %2718 = vmatprep.mubr.msk.bf16.mxu1 %vm3013_vm5, %v3012_v25 }
 0x412   : > { %2728 = vmatprep.subr.bf16.mxu1 %v3012_v25 }
 0x413   : > { %v942_v32 = vpop.permute.xlu1 %941  ;;  %v1536_v48 = vld [vmem:[#allocation4 + $0x14] sm:$0xf] }
 0x414   : > { %947 = vst.msk [vmem:[#allocation4 + $0x1c] sm:$0xf] %vm866_vm6, %v942_v32 }
 0x417   : > { %v931_v34 = vpop.permute.xlu1 %930  ;;  %v1649_v51 = vld [vmem:[#allocation4 + $0x18] sm:$0xf] }
 0x418   : > { %937 = vst.msk [vmem:[#allocation6 + $0x8] sm:$0xf] %vm866_vm6, %v931_v34  ;;  %2719 = vmatmul.mubr.msk.bf16.vlgmr.msra.gmra.mxu1 %vm976_vm7, %v1084_v35 }
 0x419   : > { %2729 = vmatpush3.bf16.xpose.msra.mxu1 %v1201_v36  ;;  %2730 = vmatprep.mubr.msk.bf16.mxu1 %vm3013_vm5, %v3012_v25 }
 0x41a   : > { %2740 = vmatprep.subr.bf16.mxu1 %v3012_v25 }
 0x41b   : > { %v958_v37 = vpop.permute.xlu1 %957  ;;  %v1762_v53 = vld [vmem:[#allocation4 + $0x1c] sm:$0xf] }
 0x41c   : > { %964 = vst.msk [vmem:[#allocation6 + $0xc] sm:$0xf] %vm866_vm6, %v958_v37 }
 0x420   : > { %2731 = vmatmul.mubr.msk.bf16.vlgmr.msra.gmra.mxu1 %vm976_vm7, %v1194_v39 }
 0x421   : > { %2741 = vmatpush3.bf16.xpose.msra.mxu1 %v1311_v40  ;;  %2742 = vmatprep.mubr.msk.bf16.mxu1 %vm3013_vm5, %v3012_v25 }
 0x422   : > { %2752 = vmatprep.subr.bf16.mxu1 %v3012_v25 }
 0x428   : > { %2743 = vmatmul.mubr.msk.bf16.vlgmr.msra.gmra.mxu1 %vm976_vm7, %v1304_v42 }
 0x429   : > { %2753 = vmatpush3.bf16.xpose.msra.mxu1 %v1432_v43  ;;  %2754 = vmatprep.mubr.msk.bf16.mxu1 %vm3013_vm5, %v3012_v25 }
 0x42a   : > { %2764 = vmatprep.subr.bf16.mxu1 %v3012_v25 }
 0x430   : > { %2755 = vmatmul.mubr.msk.bf16.vlgmr.msra.gmra.mxu1 %vm976_vm7, %v1417_v45 }
 0x431   : > { %2765 = vmatpush3.bf16.xpose.msra.mxu1 %v1545_v46  ;;  %2766 = vmatprep.mubr.msk.bf16.mxu1 %vm3013_vm5, %v3012_v25 }
 0x432   : > { %2776 = vmatprep.subr.bf16.mxu1 %v3012_v25 }
 0x438   : > { %2767 = vmatmul.mubr.msk.bf16.vlgmr.msra.gmra.mxu1 %vm976_vm7, %v1536_v48 }
 0x439   : > { %2777 = vmatpush3.bf16.xpose.msra.mxu1 %v1658_v49  ;;  %2778 = vmatprep.mubr.msk.bf16.mxu1 %vm3013_vm5, %v3012_v25 }
 0x43a   : > { %2788 = vmatprep.subr.bf16.mxu1 %v3012_v25 }
 0x440   : > { %2779 = vmatmul.mubr.msk.bf16.vlgmr.msra.gmra.mxu1 %vm976_vm7, %v1649_v51  ;;  %v1196_v51 = vld [vmem:[#allocation6 + $0x8] sm:$0xf] }
 0x441   : > { %2789 = vmatpush3.bf16.xpose.msra.mxu1 %v1771_v52  ;;  %2790 = vmatprep.mubr.msk.bf16.mxu1 %vm3013_vm5, %v3012_v25 }
 0x442   : > { %2800 = vmatprep.subr.bf16.mxu1 %v3012_v25 }
 0x448   : > { %2791 = vmatmul.mubr.msk.bf16.vlgmr.msra.gmra.mxu1 %vm976_vm7, %v1762_v53 }
 0x449   : > { %2802 = vmatprep.mubr.msk.bf16.mxu1 %vm3013_vm5, %v3012_v25 }
 0x4d0   : > { %v3358_v54 = vpop.f32.mrf.mxu1 }
 0x4d2   : > { %v2714_v55 = vpop.f32.mrf.mxu1 }
 0x4d4   : > { %v1078_v57 = vpop.f32.mrf.mxu1 }
 0x4d6   : > { %v2715_v58 = vpop.f32.mrf.mxu1 }
 0x4d7   : > { %v1029_v58 = vsel %vm976_vm7, %v3312_v27, 0.0 }
 0x4d8   : > { %v1127_v59 = vpop.f32.mrf.mxu1 }
 0x4d9   : > { %v1128_v60 = vadd.f32 %v3290_v12, %v1127_v59 }
 0x4da   : > { %v2720_v61 = vpop.f32.mrf.mxu1 }
 0x4db   : > { %v1133_v62 = vsel %vm976_vm7, %v1128_v60, -inf }
 0x4dc   : > { %1134 = vmax.xlane.f32.xlu0 %v1133_v62  ;;  %v1130_v63 = vpop.f32.mrf.mxu1  ;;  %v1306_v62 = vld [vmem:[#allocation6 + $0xc] sm:$0xf] }
 0x4de   : > { %v2721_v0 = vpop.f32.mrf.mxu1 }
 0x4e0   : > { %v1237_v1 = vpop.f32.mrf.mxu1 }
 0x4e1   : > { %v1238_v2 = vadd.f32 %v3290_v12, %v1237_v1  ;;  %v1368_v1 = vsel %vm1037_vm8, %v1306_v62, 0 }
 0x4e2   : > { %v2732_v3 = vpop.f32.mrf.mxu1 }
 0x4e3   : > { %v1243_v4 = vsel %vm976_vm7, %v1238_v2, -inf }
 0x4e4   : > { %1244 = vmax.xlane.f32.xlu1 %v1243_v4  ;;  %v1240_v5 = vpop.f32.mrf.mxu1 }
 0x4e6   : > { %v2733_v6 = vpop.f32.mrf.mxu1 }
 0x4e8   : > { %v1347_v7 = vpop.f32.mrf.mxu1 }
 0x4e9   : > { %v1348_v8 = vadd.f32 %v3290_v12, %v1347_v7 }
 0x4ea   : > { %v2744_v9 = vpop.f32.mrf.mxu1 }
 0x4eb   : > { %v1353_v13 = vsel %vm976_vm7, %v1348_v8, -inf }
 0x4ec   : > { %1354 = vmax.xlane.f32.xlu0 %v1353_v13  ;;  %v1350_v14 = vpop.f32.mrf.mxu1 }
 0x4ee   : > { %v2745_v15 = vpop.f32.mrf.mxu1 }
 0x4f0   : > { %v1468_v17 = vpop.f32.mrf.mxu1 }
 0x4f1   : > { %v1469_v18 = vadd.f32 %v2595_v16, %v1468_v17 }
 0x4f2   : > { %v2756_v19 = vpop.f32.mrf.mxu1 }
 0x4f3   : > { %v1474_v20 = vsel %vm976_vm7, %v1469_v18, -inf }
 0x4f4   : > { %1475 = vmax.xlane.f32.xlu1 %v1474_v20  ;;  %v1471_v21 = vpop.f32.mrf.mxu1 }
 0x4f6   : > { %v2757_v22 = vpop.f32.mrf.mxu1 }
 0x4f8   : > { %v1581_v23 = vpop.f32.mrf.mxu1 }
 0x4f9   : > { %v3377_v40 = vadd.f32 %v2595_v16, %v1581_v23 }
 0x4fa   : > { %v2768_v24 = vpop.f32.mrf.mxu1 }
 0x4fb   : > { %v1587_v41 = vsel %vm976_vm7, %v3377_v40, -inf }
 0x4fc   : > { %v1584_v26 = vpop.f32.mrf.mxu1 }
 0x4fe   : > { %v2769_v28 = vpop.f32.mrf.mxu1 }
 0x500   : > { %v1694_v12 = vpop.f32.mrf.mxu1 }
 0x501   : > { %v3367_v29 = vadd.f32 %v2595_v16, %v1694_v12 }
 0x502   : > { %879 = vrot.lane.b32.xlu0 %v3261_v56, %s3014_s29  ;;  %v2780_v30 = vpop.f32.mrf.mxu1 }
 0x503   : > { %v1700_v31 = vsel %vm976_vm7, %v3367_v29, -inf }
 0x504   : > { %1701 = vmax.xlane.f32.xlu1 %v1700_v31  ;;  %v1697_v32 = vpop.f32.mrf.mxu1 }
 0x506   : > { %v2781_v33 = vpop.f32.mrf.mxu1 }
 0x508   : > { %v1807_v34 = vpop.f32.mrf.mxu1 }
 0x509   : > { %v3373_v35 = vadd.f32 %v2595_v16, %v1807_v34 }
 0x50a   : > { %v2792_v36 = vpop.f32.mrf.mxu1 }
 0x50b   : > { %v1813_v37 = vsel %vm976_vm7, %v3373_v35, -inf }
 0x50c   : > { %1814 = vmax.xlane.f32.xlu1 %v1813_v37  ;;  %v1810_v38 = vpop.f32.mrf.mxu1 }
 0x50e   : > { %v2793_v39 = vpop.f32.mrf.mxu1 }
 0x51d   : > { %905 = vrot.lane.b32.xlu1 %v3261_v56, %s3021_s15 }
 0x521   : > { %1588 = vmax.xlane.f32.xlu0 %v1587_v41  ;;  %v1876_v41 = vld [vmem:[%s3597_s26] sm:$0xf] }
 0x537   : > { %932 = vrot.lane.b32.xlu0 %v3261_v56, %s3023_s20 }
 0x53b   : > { %959 = vrot.lane.b32.xlu0 %v3261_v56, %s3024_s3  ;;  %v1258_v56 = vsel %vm1037_vm8, %v1196_v51, 0 }
 0x565   : > { %v1135_v42 = vpop.xlane.xlu0 %1134 }
 0x566   : > { %v1136_v43 = vsub.f32 %v1128_v60, %v1135_v42  ;;  %v1941_v42 = vsel %vm1037_vm8, %v1876_v41, 0 }
 0x568   : > { %v1137_v44 = vmul.f32 1.442695, %v1136_v43 }
 0x56a   : > { %2921 = vpow2.f32 %v1137_v44 }
 0x56d   : > { %v1245_v45 = vpop.xlane.xlu1 %1244 }
 0x56e   : > { %v1246_v46 = vsub.f32 %v1238_v2, %v1245_v45  ;;  %v1879_v45 = vld [vmem:[%s3597_s26 + $0x4] sm:$0xf] }
 0x570   : > { %v1247_v47 = vmul.f32 1.442695, %v1246_v46  ;;  %v1889_v46 = vsel %vm1037_vm8, %v1879_v45, 0 }
 0x571   : > { %2801 = vmatpush3.bf16.msra.mxu1 %v1889_v46 }
 0x572   : > { %2923 = vpow2.f32 %v1247_v47  ;;  %2812 = vmatprep.subr.bf16.mxu1 %v3012_v25 }
 0x575   : > { %v1355_v48 = vpop.xlane.xlu0 %1354 }
 0x576   : > { %v1356_v49 = vsub.f32 %v1348_v8, %v1355_v48 }
 0x577   : > { %v2922_v50 = vpop.eup %2921 }
 0x578   : > { %v1357_v52 = vmul.f32 1.442695, %v1356_v49  ;;  %v1139_v53 = vsel %vm976_vm7, %v2922_v50, 0.0  ;;  %v1143_v55 = vpack.c.bf16 %v2922_v50, %v2922_v50 }
 0x579   : > { %v880_v57 = vpop.permute.xlu0 %879  ;;  %1140 = vadd.xlane.f32.xlu0 %v1139_v53 }
 0x57a   : > { %2925 = vpow2.f32 %v1357_v52  ;;  %884 = vst.msk [vmem:[#allocation6 + $0x10] sm:$0xf] %vm866_vm6, %v880_v57  ;;  %2725 = vmatmul.mubr.msk.bf16.vlgmr.msra.gmra.mxu0 %vm976_vm7, %v1143_v55 }
 0x57b   : > { %2735 = vmatpush3.bf16.msra.mxu0 %v1258_v56  ;;  %2736 = vmatprep.mubr.msk.bf16.mxu0 %vm3013_vm5, %v3012_v25 }
 0x57c   : > { %2746 = vmatprep.subr.bf16.mxu0 %v3012_v25 }
 0x57d   : > { %v1476_v59 = vpop.xlane.xlu1 %1475  ;;  %1030 = vadd.xlane.f32.xlu0 %v1029_v58 }
 0x57e   : > { %v1477_v60 = vsub.f32 %v1469_v18, %v1476_v59 }
 0x57f   : > { %v2924_v61 = vpop.eup %2923 }
 0x580   : > { %v1478_v63 = vmul.f32 1.442695, %v1477_v60  ;;  %v1253_v0 = vpack.c.bf16 %v2924_v61, %v2924_v61  ;;  %v1249_v9 = vsel %vm976_vm7, %v2924_v61, 0.0 }
 0x581   : > { %v1421_v2 = vld [vmem:[#allocation6 + $0x10] sm:$0xf] }
 0x582   : > { %2927 = vpow2.f32 %v1478_v63  ;;  %2737 = vmatmul.mubr.msk.bf16.vlgmr.msra.gmra.mxu0 %vm976_vm7, %v1253_v0  ;;  %v1489_v4 = vsel %vm1037_vm8, %v1421_v2, 0 }
 0x583   : > { %2747 = vmatpush3.bf16.msra.mxu0 %v1368_v1  ;;  %2748 = vmatprep.mubr.msk.bf16.mxu0 %vm3013_vm5, %v3012_v25 }
 0x584   : > { %2758 = vmatprep.subr.bf16.mxu0 %v3012_v25 }
 0x587   : > { %v2926_v27 = vpop.eup %2925 }
 0x588   : > { %v1363_v3 = vpack.c.bf16 %v2926_v27, %v2926_v27  ;;  %v1359_v14 = vsel %vm976_vm7, %v2926_v27, 0.0 }
 0x58a   : > { %2749 = vmatmul.mubr.msk.bf16.vlgmr.msra.gmra.mxu0 %vm976_vm7, %v1363_v3 }
 0x58b   : > { %2759 = vmatpush3.bf16.msra.mxu0 %v1489_v4  ;;  %2760 = vmatprep.mubr.msk.bf16.mxu0 %vm3013_vm5, %v3012_v25 }
 0x58c   : > { %2770 = vmatprep.subr.bf16.mxu0 %v3012_v25 }
 0x58d   : > { %v1702_v8 = vpop.xlane.xlu1 %1701 }
 0x58e   : > { %v1703_v18 = vsub.f32 %v3367_v29, %v1702_v8 }
 0x58f   : > { %v2928_v5 = vpop.eup %2927 }
 0x590   : > { %v1480_v6 = vsel %vm976_vm7, %v2928_v5, 0.0  ;;  %v1484_v7 = vpack.c.bf16 %v2928_v5, %v2928_v5  ;;  %v1704_v21 = vmul.f32 1.442695, %v1703_v18 }
 0x591   : > { %1481 = vadd.xlane.f32.xlu0 %v1480_v6 }
 0x592   : > { %2761 = vmatmul.mubr.msk.bf16.vlgmr.msra.gmra.mxu0 %vm976_vm7, %v1484_v7 }
 0x593   : > { %2772 = vmatprep.mubr.msk.bf16.mxu0 %vm3013_vm5, %v3012_v25 }
 0x595   : > { %1250 = vadd.xlane.f32.xlu0 %v1249_v9  ;;  %v1815_v13 = vpop.xlane.xlu1 %1814 }
 0x596   : > { %v1816_v22 = vsub.f32 %v3373_v35, %v1815_v13 }
 0x598   : > { %v1817_v26 = vmul.f32 1.442695, %v1816_v22 }
 0x599   : > { %1360 = vadd.xlane.f32.xlu0 %v1359_v14  ;;  %v906_v15 = vpop.permute.xlu1 %905 }
 0x59a   : > { %911 = vst.msk [vmem:[#allocation6 + $0x14] sm:$0xf] %vm866_vm6, %v906_v15 }
 0x5a1   : > { %v1540_v16 = vld [vmem:[#allocation6 + $0x14] sm:$0xf] }
 0x5a2   : > { %v1602_v17 = vsel %vm1037_vm8, %v1540_v16, 0 }
 0x5a3   : > { %2771 = vmatpush3.bf16.msra.mxu0 %v1602_v17 }
 0x5a4   : > { %2782 = vmatprep.subr.bf16.mxu0 %v3012_v25 }
 0x5aa   : > { %v1589_v19 = vpop.xlane.xlu0 %1588 }
 0x5ab   : > { %v1590_v20 = vsub.f32 %v3377_v40, %v1589_v19  ;;  %v2043_v19 = vld [vmem:[%s3597_s26 + $0xc] sm:$0xf] }
 0x5ad   : > { %v1591_v23 = vmul.f32 1.442695, %v1590_v20 }
 0x5ae   : > { %v933_v24 = vpop.permute.xlu0 %932 }
 0x5af   : > { %2929 = vpow2.f32 %v1591_v23  ;;  %938 = vst.msk [vmem:[#allocation6 + $0x18] sm:$0xf] %vm866_vm6, %v933_v24 }
 0x5b0   : > { %2931 = vpow2.f32 %v1704_v21  ;;  %v2053_v21 = vsel %vm1037_vm8, %v2043_v19, 0 }
 0x5b1   : > { %2933 = vpow2.f32 %v1817_v26 }
 0x5b2   : > { %v960_v28 = vpop.permute.xlu0 %959 }
 0x5b3   : > { %965 = vst.msk [vmem:[#allocation6 + $0x1c] sm:$0xf] %vm866_vm6, %v960_v28 }
 0x5b6   : > { %v1653_v30 = vld [vmem:[#allocation6 + $0x18] sm:$0xf] }
 0x5b7   : > { %v1715_v33 = vsel %vm1037_vm8, %v1653_v30, 0 }
 0x5ba   : > { %v1766_v36 = vld [vmem:[#allocation6 + $0x1c] sm:$0xf] }
 0x5bb   : > { %v1828_v39 = vsel %vm1037_vm8, %v1766_v36, 0  ;;  %v1986_v36 = vld [vmem:[%s3597_s26 + $0x8] sm:$0xf] }
 0x5bc   : > { %v2930_v12 = vpop.eup %2929  ;;  %v1996_v41 = vsel %vm1037_vm8, %v1986_v36, 0 }
 0x5bd   : > { %v1593_v29 = vsel %vm976_vm7, %v2930_v12, 0.0  ;;  %v1597_v31 = vpack.c.bf16 %v2930_v12, %v2930_v12  ;;  %v2932_v32 = vpop.eup %2931 }
 0x5be   : > { %1594 = vadd.xlane.f32.xlu1 %v1593_v29  ;;  %v1706_v34 = vsel %vm976_vm7, %v2932_v32, 0.0  ;;  %v2934_v35 = vpop.eup %2933  ;;  %v1710_v38 = vpack.c.bf16 %v2932_v32, %v2932_v32 }
 0x5bf   : > { %2773 = vmatmul.mubr.msk.bf16.vlgmr.msra.gmra.mxu0 %vm976_vm7, %v1597_v31  ;;  %v1819_v37 = vsel %vm976_vm7, %v2934_v35, 0.0  ;;  %v1823_v40 = vpack.c.bf16 %v2934_v35, %v2934_v35 }
 0x5c0   : > { %2783 = vmatpush3.bf16.msra.mxu0 %v1715_v33  ;;  %2784 = vmatprep.mubr.msk.bf16.mxu0 %vm3013_vm5, %v3012_v25 }
 0x5c1   : > { %2794 = vmatprep.subr.bf16.mxu0 %v3012_v25 }
 0x5c2   : > { %1707 = vadd.xlane.f32.xlu1 %v1706_v34 }
 0x5c6   : > { %1820 = vadd.xlane.f32.xlu1 %v1819_v37 }
 0x5c7   : > { %2785 = vmatmul.mubr.msk.bf16.vlgmr.msra.gmra.mxu0 %vm976_vm7, %v1710_v38 }
 0x5c8   : > { %2795 = vmatpush3.bf16.msra.mxu0 %v1828_v39  ;;  %2796 = vmatprep.mubr.msk.bf16.mxu0 %vm3013_vm5, %v3012_v25 }
 0x5c9   : > { %2806 = vmatprep.subr.bf16.mxu0 %v3012_v25 }
 0x5cf   : > { %2797 = vmatmul.mubr.msk.bf16.vlgmr.msra.gmra.mxu0 %vm976_vm7, %v1823_v40 }
 0x5d0   : > { %2808 = vmatprep.mubr.msk.bf16.mxu0 %vm3013_vm5, %v3012_v25  ;;  %2807 = vmatpush3.bf16.msra.mxu0 %v1941_v42 }
 0x5d1   : > { %2818 = vmatprep.subr.bf16.mxu0 %v3012_v25 }
 0x602   : > { %v1141_v43 = vpop.xlane.xlu0 %1140 }
 0x606   : > { %v1031_v44 = vpop.xlane.xlu0 %1030 }
 0x607   : > { %2935 = vrcp.f32 %v1031_v44 }
 0x608   : > { %2937 = vrcp.f32 %v1141_v43 }
 0x614   : > { %v2936_v47 = vpop.eup %2935 }
 0x615   : > { %v1081_v48 = vmul.f32 %v2936_v47, %v3358_v54  ;;  %v2938_v52 = vpop.eup %2937 }
 0x617   : > { %v1082_v49 = vpack.c.bf16 %v1081_v48, %v1081_v48 }
 0x619   : > { %1083 = vst.msk [vmem:[#allocation7] sm:$0xf] %vm866_vm6, %v1082_v49 }
 0x61a   : > { %v1482_v50 = vpop.xlane.xlu0 %1481 }
 0x61e   : > { %v1251_v51 = vpop.xlane.xlu0 %1250 }
 0x61f   : > { %2939 = vrcp.f32 %v1251_v51 }
 0x622   : > { %v1361_v53 = vpop.xlane.xlu0 %1360 }
 0x623   : > { %2941 = vrcp.f32 %v1361_v53 }
 0x624   : > { %2943 = vrcp.f32 %v1482_v50 }
 0x62c   : > { %v2940_v61 = vpop.eup %2939 }
 0x630   : > { %v2942_v2 = vpop.eup %2941 }
 0x631   : > { %v2944_v9 = vpop.eup %2943 }
 0x63a   : > { %v1184_v55 = vpop.f32.mrf.mxu0 }
 0x63b   : > { %v1190_v57 = vmul.f32 %v2938_v52, %v1184_v55 }
 0x63c   : > { %v2726_v56 = vpop.f32.mrf.mxu0 }
 0x63d   : > { %v1191_v58 = vpack.c.bf16 %v1190_v57, %v1190_v57 }
 0x63e   : > { %v1187_v59 = vpop.f32.mrf.mxu0 }
 0x63f   : > { %1193 = vst.msk [vmem:[#allocation7 + $0x4] sm:$0xf] %vm866_vm6, %v1191_v58 }
 0x640   : > { %v2727_v60 = vpop.f32.mrf.mxu0 }
 0x642   : > { %v1294_v54 = vpop.f32.mrf.mxu0 }
 0x643   : > { %v1300_v62 = vmul.f32 %v2940_v61, %v1294_v54 }
 0x644   : > { %v2738_v63 = vpop.f32.mrf.mxu0 }
 0x645   : > { %v1301_v0 = vpack.c.bf16 %v1300_v62, %v1300_v62 }
 0x646   : > { %v1297_v1 = vpop.f32.mrf.mxu0 }
 0x647   : > { %1303 = vst.msk [vmem:[#allocation7 + $0x8] sm:$0xf] %vm866_vm6, %v1301_v0  ;;  %v1595_v22 = vpop.xlane.xlu1 %1594 }
 0x648   : > { %v2739_v27 = vpop.f32.mrf.mxu0  ;;  %2945 = vrcp.f32 %v1595_v22 }
 0x64a   : > { %v1404_v3 = vpop.f32.mrf.mxu0 }
 0x64b   : > { %v1410_v4 = vmul.f32 %v2942_v2, %v1404_v3  ;;  %v1708_v23 = vpop.xlane.xlu1 %1707 }
 0x64c   : > { %v2750_v5 = vpop.f32.mrf.mxu0  ;;  %2947 = vrcp.f32 %v1708_v23 }
 0x64d   : > { %v1411_v6 = vpack.c.bf16 %v1410_v4, %v1410_v4  ;;  %v2612_v4 = vld [vmem:[%s3598_s28] ss:$0 sm:$0xff] }
 0x64e   : > { %v1407_v7 = vpop.f32.mrf.mxu0 }
 0x64f   : > { %1413 = vst.msk [vmem:[#allocation7 + $0xc] sm:$0xf] %vm866_vm6, %v1411_v6  ;;  %v1821_v26 = vpop.xlane.xlu1 %1820 }
 0x650   : > { %v2751_v8 = vpop.f32.mrf.mxu0  ;;  %2949 = vrcp.f32 %v1821_v26 }
 0x652   : > { %v1525_v13 = vpop.f32.mrf.mxu0 }
 0x653   : > { %v1531_v14 = vmul.f32 %v2944_v9, %v1525_v13 }
 0x654   : > { %v2762_v15 = vpop.f32.mrf.mxu0 }
 0x655   : > { %v1532_v16 = vpack.c.bf16 %v1531_v14, %v1531_v14  ;;  %v2946_v24 = vpop.eup %2945 }
 0x656   : > { %v1528_v17 = vpop.f32.mrf.mxu0 }
 0x657   : > { %1534 = vst.msk [vmem:[#allocation7 + $0x10] sm:$0xf] %vm866_vm6, %v1532_v16 }
 0x658   : > { %v2763_v18 = vpop.f32.mrf.mxu0 }
 0x659   : > { %v2948_v33 = vpop.eup %2947 }
 0x65d   : > { %v2950_v43 = vpop.eup %2949 }
 0x65e   : > { %v2901_v20 = vld [vmem:[#allocation7] ss:$16 sps:$4 sm:$0xff]  }
 0x65f   : > { %2809 = vmatmul.mubr.msk.bf16.vlgmr.msra.gmra.mxu0 %vm976_vm7, %v2901_v20 }
 0x660   : > { %2819 = vmatpush3.bf16.msra.mxu0 %v2053_v21  ;;  %2820 = vmatprep.mubr.msk.bf16.mxu0 %vm3013_vm5, %v3012_v25 }
 0x661   : > { %2832 = vmatprep.subr.bf16.mxu0 %v3012_v25 }
 0x67f   : > { %v1638_v28 = vpop.f32.mrf.mxu0 }
 0x680   : > { %v1644_v12 = vmul.f32 %v2946_v24, %v1638_v28 }
 0x681   : > { %v2774_v30 = vpop.f32.mrf.mxu0 }
 0x682   : > { %v1645_v29 = vpack.c.bf16 %v1644_v12, %v1644_v12  ;;  %v2905_v12 = vld [vmem:[%s3171_s5 + $0x8] sm:$0xff]   ;;  %v2906_v30 = vld [vmem:[%s3171_s5] sm:$0xff]  }
 0x683   : > { %v1641_v31 = vpop.f32.mrf.mxu0 }
 0x684   : > { %1647 = vst.msk [vmem:[#allocation7 + $0x14] sm:$0xf] %vm866_vm6, %v1645_v29 }
 0x685   : > { %v2775_v32 = vpop.f32.mrf.mxu0 }
 0x687   : > { %v1751_v34 = vpop.f32.mrf.mxu0 }
 0x688   : > { %v1757_v35 = vmul.f32 %v2948_v33, %v1751_v34 }
 0x689   : > { %v2786_v37 = vpop.f32.mrf.mxu0 }
 0x68a   : > { %v1758_v38 = vpack.c.bf16 %v1757_v35, %v1757_v35 }
 0x68b   : > { %v1754_v39 = vpop.f32.mrf.mxu0  ;;  %v2902_v40 = vld [vmem:[#allocation7 + $0x4] ss:$16 sps:$4 sm:$0xff]  }
 0x68c   : > { %1760 = vst.msk [vmem:[#allocation7 + $0x18] sm:$0xf] %vm866_vm6, %v1758_v38  ;;  %2803 = vmatmul.mubr.msk.bf16.vlgmr.msra.gmra.mxu1 %vm976_vm7, %v2902_v40  ;;  %v2613_v38 = vld [vmem:[%s691_s4] ss:$0 sm:$0xff] }
 0x68d   : > { %v2787_v42 = vpop.f32.mrf.mxu0  ;;  %2813 = vmatpush3.bf16.msra.mxu1 %v1996_v41  ;;  %2814 = vmatprep.mubr.msk.bf16.mxu1 %vm3013_vm5, %v3012_v25 }
 0x68e   : > { %2824 = vmatprep.subr.bf16.mxu1 %v3012_v25  ;;  %v2614_v42 = vld [vmem:[%s694_s21] ss:$0 sm:$0xff] }
 0x68f   : > { %v1864_v44 = vpop.f32.mrf.mxu0 }
 0x690   : > { %v1870_v45 = vmul.f32 %v2950_v43, %v1864_v44 }
 0x691   : > { %v2798_v46 = vpop.f32.mrf.mxu0 }
 0x692   : > { %v1871_v47 = vpack.c.bf16 %v1870_v45, %v1870_v45 }
 0x693   : > { %v1867_v48 = vpop.f32.mrf.mxu0  ;;  %v2903_v49 = vld [vmem:[#allocation7 + $0x8] ss:$16 sps:$4 sm:$0xff]  }
 0x694   : > { %1873 = vst.msk [vmem:[#allocation7 + $0x1c] sm:$0xf] %vm866_vm6, %v1871_v47  ;;  %2815 = vmatmul.mubr.msk.bf16.vlgmr.msra.gmra.mxu1 %vm976_vm7, %v2903_v49  ;;  %v2907_v47 = vld [vmem:[%s3181_s27 + $0x38] sm:$0xff]   ;;  %v2908_v48 = vld [vmem:[%s3181_s27 + $0x30] sm:$0xff]   ;;  %v2909_v49 = vld [vmem:[%s3181_s27 + $0x28] sm:$0xff]  }
 0x695   : > { %v2799_v50 = vpop.f32.mrf.mxu0  ;;  %2828 = vmatprep.mubr.msk.bf16.mxu1 %vm3013_vm5, %v3012_v25  ;;  %2825 = vmatpush3.bf16.msra.mxu1 %v2905_v12 }
 0x696   : > { %2826 = vmatprep.subr.bf16.mxu1 %v3012_v25  ;;  %v2910_v50 = vld [vmem:[%s3181_s27 + $0x20] sm:$0xff]  }
 0x699   : > { %2827 = vmatpush3.bf16.msra.mxu1 %v2906_v30 }
 0x69b   : > { %v2904_v51 = vld [vmem:[#allocation7 + $0xc] ss:$16 sps:$4 sm:$0xff]  }
 0x69c   : > { %2821 = vmatmul.mubr.msk.bf16.vlgmr.msra.gmra.mxu0 %vm976_vm7, %v2904_v51  ;;  %v2911_v51 = vld [vmem:[%s3181_s27 + $0x18] sm:$0xff]  }
 0x69d   : > { %2848 = vmatprep.mubr.msk.bf16.mxu0 %vm3013_vm5, %v3012_v25  ;;  %2833 = vmatpush3.bf16.msra.mxu0 %v2907_v47 }
 0x69e   : > { %2834 = vmatprep.subr.bf16.mxu0 %v3012_v25 }
 0x6a1   : > { %2835 = vmatpush3.bf16.msra.mxu0 %v2908_v48 }
 0x6a2   : > { %2836 = vmatprep.subr.bf16.mxu0 %v3012_v25 }
 0x6a5   : > { %2837 = vmatpush3.bf16.msra.mxu0 %v2909_v49 }
 0x6a6   : > { %2838 = vmatprep.subr.bf16.mxu0 %v3012_v25 }
 0x6a9   : > { %2839 = vmatpush3.bf16.msra.mxu0 %v2910_v50 }
 0x6aa   : > { %2840 = vmatprep.subr.bf16.mxu0 %v3012_v25 }
 0x6ad   : > { %2841 = vmatpush3.bf16.msra.mxu0 %v2911_v51 }
 0x6ae   : > { %2842 = vmatprep.subr.bf16.mxu0 %v3012_v25 }
 0x71f   : > { %v1977_v52 = vpop.f32.mrf.mxu0 }
 0x721   : > { %v2810_v53 = vpop.f32.mrf.mxu0 }
 0x722   : > { %v2913_v53 = vld [vmem:[%s3181_s27 + $0x8] sm:$0xff]  }
 0x723   : > { %v1980_v55 = vpop.f32.mrf.mxu0 }
 0x725   : > { %v2811_v57 = vpop.f32.mrf.mxu0 }
 0x726   : > { %v2615_v57 = vld [vmem:[%s702_s7] ss:$0 sm:$0xff] }
 0x74c   : > { %v1925_v56 = vpop.f32.mrf.mxu1 }
 0x74d   : > { %v1978_v63 = vadd.f32 %v1977_v52, %v1925_v56  ;;  %v2912_v52 = vld [vmem:[%s3181_s27 + $0x10] sm:$0xff]  }
 0x74e   : > { %v2804_v58 = vpop.f32.mrf.mxu1  ;;  %2843 = vmatpush3.bf16.msra.mxu0 %v2912_v52 }
 0x74f   : > { %2844 = vmatprep.subr.bf16.mxu0 %v3012_v25 }
 0x750   : > { %v1928_v59 = vpop.f32.mrf.mxu1 }
 0x751   : > { %v1981_v2 = vadd.f32 %v1980_v55, %v1928_v59  ;;  %v2914_v55 = vld [vmem:[%s3181_s27] sm:$0xff]  }
 0x752   : > { %v2805_v60 = vpop.f32.mrf.mxu1  ;;  %2845 = vmatpush3.bf16.msra.mxu0 %v2913_v53 }
 0x753   : > { %2846 = vmatprep.subr.bf16.mxu0 %v3012_v25 }
 0x754   : > { %v2032_v61 = vpop.f32.mrf.mxu1 }
 0x755   : > { %v2039_v1 = vadd.f32 %v2032_v61, %v1978_v63 }
 0x756   : > { %v2816_v54 = vpop.f32.mrf.mxu1  ;;  %2847 = vmatpush3.bf16.msra.mxu0 %v2914_v55 }
 0x758   : > { %v2035_v62 = vpop.f32.mrf.mxu1 }
 0x759   : > { %v2040_v6 = vadd.f32 %v2035_v62, %v1981_v2 }
 0x75a   : > { %v2817_v0 = vpop.f32.mrf.mxu1 }
 0x75c   : > { %v2089_v27 = vpop.f32.mrf.mxu0 }
 0x75d   : > { %v2096_v3 = vadd.f32 %v2089_v27, %v2039_v1 }
 0x75e   : > { %v2822_v5 = vpop.f32.mrf.mxu0 }
 0x75f   : > { %v2098_v7 = vadd.f32 %v2096_v3, %v3203_v10 }
 0x760   : > { %v2092_v8 = vpop.f32.mrf.mxu0 }
 0x761   : > { %v3475_v9 = vadd.f32 %v2612_v4, %v2098_v7  ;;  %v2097_v13 = vadd.f32 %v2092_v8, %v2040_v6 }
 0x762   : > { %v2823_v14 = vpop.f32.mrf.mxu0 }
 0x763   : > { %v2099_v15 = vadd.f32 %v2097_v13, %v3205_v11  ;;  %v2111_v16 = vsel %vm738_vm4, %v3475_v9, 0.0 }
 0x764   : > { %2112 = vadd.xlane.f32.xlu0 %v2111_v16 }
 0x765   : > { %v3480_v17 = vadd.f32 %v2612_v4, %v2099_v15 }
 0x767   : > { %v2114_v18 = vsel %vm738_vm4, %v3480_v17, 0.0 }
 0x768   : > { %2115 = vadd.xlane.f32.xlu1 %v2114_v18 }
 0x7ed   : > { %v2113_v10 = vpop.xlane.xlu0 %2112 }
 0x7ee   : > { %v2117_v19 = vmul.f32 0.03125, %v2113_v10 }
 0x7f0   : > { %v2119_v20 = vsub.f32 %v3475_v9, %v2117_v19 }
 0x7f1   : > { %v2116_v21 = vpop.xlane.xlu1 %2115 }
 0x7f2   : > { %v2118_v22 = vmul.f32 0.03125, %v2116_v21  ;;  %v2121_v23 = vmul.f32 %v2119_v20, %v2119_v20 }
 0x7f4   : > { %v2120_v11 = vsub.f32 %v3480_v17, %v2118_v22  ;;  %v2123_v24 = vsel %vm738_vm4, %v2121_v23, 0.0 }
 0x7f5   : > { %2124 = vadd.xlane.f32.xlu0 %v2123_v24 }
 0x7f6   : > { %v2122_v26 = vmul.f32 %v2120_v11, %v2120_v11 }
 0x7f8   : > { %v2126_v28 = vsel %vm738_vm4, %v2122_v26, 0.0 }
 0x7f9   : > { %2127 = vadd.xlane.f32.xlu1 %v2126_v28 }
 0x87e   : > { %v2125_v29 = vpop.xlane.xlu0 %2124 }
 0x87f   : > { %v2129_v31 = vmul.f32 0.03125, %v2125_v29 }
 0x881   : > { %v2131_v32 = vadd.f32 1e-05, %v2129_v31 }
 0x882   : > { %v2128_v33 = vpop.xlane.xlu1 %2127 }
 0x883   : > { %2951 = vrsqrt.f32 %v2131_v32  ;;  %v2130_v34 = vmul.f32 0.03125, %v2128_v33 }
 0x885   : > { %v2132_v35 = vadd.f32 1e-05, %v2130_v34 }
 0x887   : > { %2953 = vrsqrt.f32 %v2132_v35 }
 0x890   : > { %v2952_v36 = vpop.eup %2951 }
 0x891   : > { %v2135_v37 = vmul.f32 %v2952_v36, %v2119_v20  ;;  %v2627_v20 = vld [vmem:[%s710_s16] ss:$0 sm:$0xff] }
 0x893   : > { %v2143_v41 = vmul.f32 %v2613_v38, %v2135_v37 }
 0x894   : > { %v2954_v39 = vpop.eup %2953 }
 0x895   : > { %v2136_v40 = vmul.f32 %v2954_v39, %v2120_v11  ;;  %v2151_v44 = vadd.f32 %v2614_v42, %v2143_v41 }
 0x897   : > { %v2144_v43 = vmul.f32 %v2613_v38, %v2136_v40 }
 0x899   : > { %v2152_v45 = vadd.f32 %v2614_v42, %v2144_v43 }
 0x89b   : > { %v2153_v46 = vpack.c.bf16 %v2152_v45, %v2151_v44 }
 0x89d   : > { %2829 = vmatmul.mubr.msk.bf16.vlgmr.msra.gmra.mxu1 %vm738_vm4, %v2153_v46 }
 0x95d   : > { %v2214_v56 = vpop.f32.mrf.mxu1 }
 0x95e   : > { %v2215_v58 = vadd.f32 %v2615_v57, %v2214_v56 }
 0x95f   : > { %v2830_v59 = vpop.f32.mrf.mxu1 }
 0x960   : > { %v2221_v60 = vmul.f32 %v2215_v58, %v2215_v58 }
 0x961   : > { %v2217_v61 = vpop.f32.mrf.mxu1 }
 0x962   : > { %v2223_v54 = vmul.f32 %v2221_v60, %v2215_v58  ;;  %v2218_v62 = vadd.f32 %v2615_v57, %v2217_v61 }
 0x963   : > { %v2831_v63 = vpop.f32.mrf.mxu1 }
 0x964   : > { %v2225_v0 = vmul.f32 0.044715, %v2223_v54  ;;  %v2222_v1 = vmul.f32 %v2218_v62, %v2218_v62 }
 0x966   : > { %v2227_v27 = vadd.f32 %v2225_v0, %v2215_v58  ;;  %v2224_v2 = vmul.f32 %v2222_v1, %v2218_v62 }
 0x968   : > { %v2229_v25 = vmul.f32 0.7978846, %v2227_v27  ;;  %v2226_v3 = vmul.f32 0.044715, %v2224_v2 }
 0x96a   : > { %2955 = vtanh.f32 %v2229_v25  ;;  %v2228_v4 = vadd.f32 %v2226_v3, %v2218_v62 }
 0x96c   : > { %v2230_v5 = vmul.f32 0.7978846, %v2228_v4 }
 0x96e   : > { %2957 = vtanh.f32 %v2230_v5 }
 0x977   : > { %v2956_v6 = vpop.eup %2955 }
 0x978   : > { %v2233_v7 = vadd.f32 1.0, %v2956_v6 }
 0x97a   : > { %v2235_v13 = vmul.f32 0.5, %v2233_v7 }
 0x97b   : > { %v2958_v8 = vpop.eup %2957 }
 0x97c   : > { %v2234_v14 = vadd.f32 1.0, %v2958_v8  ;;  %v2237_v16 = vmul.f32 %v2235_v13, %v2215_v58 }
 0x97e   : > { %v2236_v15 = vmul.f32 0.5, %v2234_v14 }
 0x980   : > { %v2238_v18 = vmul.f32 %v2236_v15, %v2218_v62 }
 0x982   : > { %v2255_v10 = vpack.c.bf16 %v2238_v18, %v2237_v16 }
 0x984   : > { %2849 = vmatmul.mubr.bf16.vlgmr.msra.gmra.mxu0 %v2255_v10 }
 0xa44   : > { %v2338_v19 = vpop.f32.mrf.mxu0 }
 0xa45   : > { %v2345_v21 = vadd.f32 %v2338_v19, %v3475_v9 }
 0xa46   : > { %v2850_v22 = vpop.f32.mrf.mxu0 }
 0xa47   : > { %v2354_v23 = vadd.f32 %v2627_v20, %v2345_v21 }
 0xa48   : > { %v2341_v11 = vpop.f32.mrf.mxu0 }
 0xa49   : > { %2356 = vst.msk [vmem:[#allocation2] sm:$0xff] %vm738_vm4, %v2354_v23  ;;  %v2346_v24 = vadd.f32 %v2341_v11, %v3480_v17  ;;  %2361 = sbr.rel (%p2628_p6) target bundleno = 2639 (0xa4f), region = 88 }
 0xa4a   : > { %v2851_v26 = vpop.f32.mrf.mxu0 }
 0xa4b   : > { %v2355_v28 = vadd.f32 %v2627_v20, %v2346_v24 }
 0xa4d   : > { %2357 = vst.msk [vmem:[#allocation2 + $0x8] sm:$0xff] %vm738_vm4, %v2355_v28 }
 0xa4e   : > { %2362 = vst.msk [vmem:[#allocation8] sm:$0xff] %vm738_vm4, %v2354_v23  ;;  %2363 = vst.msk [vmem:[#allocation8 + $0x8] sm:$0xff] %vm738_vm4, %v2355_v28 }
 0xa4f PF: > { %s3599_s23 = sld [smem:[#allocation12_spill]]  ;;  %s3025_s15 = smov [#allocation8]  }
 0xa50   : > { %s2373_s19 = sshll.u32 %s3025_s15, 4  ;;  %s2374_s19 = int_to_ptr.vmem [resolvable:$true] %s2373_s19 }
 0xa51   : > { %s2959_s20 = scalar_lea.vmem %s2374_s19, 256  ;;  %p2966_p11 = scmp.lt.s32.totalorder %s2374_s19, %s2374_s19 }
 0xa52   : > { %p2960_p8 = scmp.ne.s32.totalorder %s2374_s19, %s2959_s20  ;;  %p2967_p12 = scmp.lt.s32.totalorder %s2959_s20, %s2959_s20 }
 0xa54   : > { %p2968_p13 = por %p2967_p12, %p2966_p11 }
 0xa55   : > { %s3600_s16 = sadd.s32 4294967295, %s3599_s23  }
 0xa56   : > { %p3536_p7 = scmp.eq.s32.totalorder %s3600_s16, 1 }
 0xa58   : > { %p2961_p9 = pnand %p2960_p8, %p3536_p7 }
 0xa5a   : > { %p2962_p10 = pneg %p2961_p9 }
 0xa5c   : > { %p2969_p0 = pnand %p2968_p13, %p2962_p10 }
 0xa5e   : > { %2972 = shalt.err (!%p2969_p0)
}
 0xa5f   : > { %s3026_s18 = smov 128   ;;  %s3027_s3 = smov 8  }
 0xa60   : > { %s3602_s22 = sld [smem:[#allocation19_spill]] }
 0xa66   : > { %2853 = dma.vmem_to_hbm [thread:$0]  (%p3536_p7), %s2374_s19, 256, %s3602_s22, [#allocation9], %s3026_s18, %s3026_s18, %s3027_s3  }
 0xa67   : > { %2996 = dma.done.wait (%p3536_p7), [#allocation9], 256  }
 0xa68   : > { %2998 = vsyncadd (%p3536_p7), [#allocation9], 4294967040 }
 0xa69 PF: > { %s3603_s28 = sld [smem:[#allocation12_spill]] }
 0xa6a   : > { %s3604_s18 = sld [smem:[#allocation11_spill]] }
 0xa6b   : > { %s3605_s19 = sld [smem:[#allocation13_spill]] }
 0xa6f   : > { %s26_s20 = sadd.s32 1, %s3603_s28  }
 0xa70   : > { %p23_p1 = scmp.ge.s32.totalorder %s26_s20, 4  }
 0xa72   :  { %25 = sbr.rel (!%p23_p1) target bundleno = 8 (0x8), region = 184 }
 0xa77   :  { %2389 = vsyncpa [#allocation9], 1 }
 0xa78   :  { %2391 = vsyncpa [#allocation9 + $0x1], 1 }

</bundles_post_ra>
